<compile_context>
chip_gen: v7x
topology: tpu7x:2x2x1
jax: 0.10.0
libtpu: 0.0.40
codegen_flags: <defaults>
</compile_context>

<pallas_src>
import functools
import math

import jax
import jax.numpy as jnp
from jax.experimental import pallas as pl
from jax.experimental.pallas import tpu as pltpu

_SQRT_HALF = 0.7071067811865476


def _round_up(n, m):
    return ((n + m - 1) // m) * m


def _gelu(x, approximate):
    if approximate:
        # tanh approximation -> transcendental goes to the EUP slot (opt-in;
        # differs slightly from torch's default exact-erf GELU).
        return jax.nn.gelu(x, approximate=True)
    # Exact erf-based GELU: matches torch.nn.GELU() default.
    return 0.5 * x * (1.0 + jax.lax.erf(x * _SQRT_HALF))


# --------------------------------------------------------------------------- #
# Kernel
# --------------------------------------------------------------------------- #
def fractal_ff_kernel(x_ref, w1_ref, b1_ref, w2_ref, b2_ref, scale_ref, o_ref,
                      *, iterative_layers, h_chunk, approximate_gelu):
    compute_dtype = w1_ref.dtype          # bf16 weights -> bf16 MXU inputs
    hidden = w1_ref.shape[1]
    n_chunks = hidden // h_chunk

    # Hoist bias loads / f32 casts / per-chunk slices once per row tile; they
    # are reused by all (1 + iterative_layers) MLP evaluations (JAX does not
    # CSE the repeated slice+broadcast if they stay inside mlp()).
    b1_f32 = b1_ref[...].astype(jnp.float32)                    # (1, H)
    b1_chunks = [b1_f32[:, c * h_chunk:(c + 1) * h_chunk] for c in range(n_chunks)]
    b2_f32 = b2_ref[...].astype(jnp.float32)                    # (1, D)
    scale = scale_ref[0]

    x_f32 = x_ref[...].astype(jnp.float32)

    def mlp(v_f32):
        v = v_f32.astype(compute_dtype)
        acc = None
        # Chunk the hidden dim so the live (tile_m, h_chunk) intermediate (and
        # its GELU) stays bounded; fc2 partials accumulate into (tile_m, D) f32.
        for c in range(n_chunks):
            c0 = c * h_chunk
            h = jnp.dot(v, w1_ref[:, c0:c0 + h_chunk],
                        preferred_element_type=jnp.float32)
            h = _gelu(h + b1_chunks[c], approximate_gelu)
            part = jnp.dot(h.astype(compute_dtype), w2_ref[c0:c0 + h_chunk, :],
                           preferred_element_type=jnp.float32)
            acc = part if acc is None else acc + part
        return acc + b2_f32

    # Fractal residual chain, kept in f32 throughout.
    result = x_f32 + mlp(x_f32) * scale
    for i in range(iterative_layers):
        result = result + mlp(result) * (scale / (2.0 ** (i + 1)))

    o_ref[...] = result.astype(o_ref.dtype)


# --------------------------------------------------------------------------- #
# Generation-aware sizing helpers
# --------------------------------------------------------------------------- #
def _device_kind():
    try:
        return jax.devices()[0].device_kind.lower()
    except Exception:
        return ""


def _gen_params():
    kind = _device_kind()
    if "v7" in kind:
        # 64 MiB physical VMEM per TC -> leave headroom; 2 TCs per chip.
        return dict(vmem_limit=48 * 1024 * 1024, tile_m_cap=256, two_cores=True)
    if "tpu" in kind or "v5" in kind or "v6" in kind:
        # 128 MiB physical VMEM parts: bigger row tiles are free.
        return dict(vmem_limit=96 * 1024 * 1024, tile_m_cap=512, two_cores=False)
    return dict(vmem_limit=None, tile_m_cap=256, two_cores=False)


def _choose_hidden_chunk(H, target=1024):
    """(h_chunk, Hp): chunk is a multiple of 256 (or the full 128-padded H when
    small); H is padded up to a chunk multiple so no degenerate K=128 dots."""
    Hp128 = _round_up(H, 128)
    if Hp128 <= target:
        return Hp128, Hp128
    best_chunk, best_hp = None, None
    for chunk in range(target, 255, -256):          # 1024, 768, 512, 256
        hp = _round_up(H, chunk)
        if best_hp is None or hp < best_hp:         # min padding, ties -> larger chunk
            best_chunk, best_hp = chunk, hp
    return best_chunk, best_hp


def _choose_tile_m(N, cap, want_multi_tile):
    """Pick a 128-multiple row tile: minimize padded-row compute (within 5%),
    prefer larger tiles (fewer grid steps); keep >= 2 tiles on 2-TC chips."""
    Np128 = _round_up(max(N, 1), 128)
    cap = max(128, min(cap, Np128))
    candidates = list(range(128, cap + 1, 128))
    nps = [_round_up(N, t) for t in candidates]
    min_np = min(nps)
    best = max(t for t, p in zip(candidates, nps) if p <= min_np * 1.05)
    if want_multi_tile and _round_up(N, best) // best < 2 and Np128 >= 256:
        best = max(128, min(best, (Np128 // 256) * 128))
    return best


def _vmem_estimate(tile_m, Dp, Hp, h_chunk, w_bytes, x_bytes, out_bytes):
    weights = 2 * (Dp * Hp + Hp * Dp) * w_bytes        # resident, double-buffered specs
    biases = 2 * (Hp + Dp) * w_bytes
    x_tiles = 2 * tile_m * Dp * x_bytes                # streamed, double-buffered
    o_tiles = 2 * tile_m * Dp * out_bytes
    live = tile_m * (2 * h_chunk + 5 * Dp) * 4         # f32 intermediates / residual
    return weights + biases + x_tiles + o_tiles + live


# --------------------------------------------------------------------------- #
# Wrapper
# --------------------------------------------------------------------------- #
def fractal_feed_forward(x, w1, b1, w2, b2, fractal_scale, *,
                         iterative_layers=3, tile_m=None, approximate_gelu=False):
    """x: [..., D]; w1: [D, H]; b1: [H]; w2: [H, D]; b2: [D]; scalar scale.

    For best MXU throughput pass w1/w2 (and optionally x) as bfloat16;
    accumulation and the residual chain stay f32.  Callers that reuse the same
    parameters across many calls should pre-pad them to 128-aligned shapes
    once — the pads below are skipped when dims are already aligned.
    """
    orig_shape = x.shape
    D = orig_shape[-1]
    H = w1.shape[1]
    x2d = x.reshape(-1, D)
    N = x2d.shape[0]

    gen = _gen_params()
    cap = gen["tile_m_cap"] if tile_m is None else max(128, _round_up(tile_m, 128))

    Dp = _round_up(D, 128)
    h_chunk, Hp = _choose_hidden_chunk(H)
    tile_m_sel = _choose_tile_m(N, cap, gen["two_cores"])
    Np = _round_up(N, tile_m_sel)

    # Halve streamed x bytes when the weights (and hence the MXU inputs) are bf16.
    x_in_dtype = jnp.bfloat16 if w1.dtype == jnp.bfloat16 else x.dtype
    w_bytes = jnp.dtype(w1.dtype).itemsize
    x_bytes = jnp.dtype(x_in_dtype).itemsize
    out_bytes = jnp.dtype(x.dtype).itemsize

    # VMEM-residency check: shrink h_chunk, then tile_m, before calling.
    budget = gen["vmem_limit"]
    if budget is not None:
        while _vmem_estimate(tile_m_sel, Dp, Hp, h_chunk, w_bytes, x_bytes,
                             out_bytes) > budget:
            if h_chunk > 512:
                h_chunk = 512
                Hp = _round_up(H, h_chunk)
            elif h_chunk > 256:
                h_chunk = 256
                Hp = _round_up(H, h_chunk)
            elif tile_m_sel > 128:
                tile_m_sel = 128
                Np = _round_up(N, tile_m_sel)
            else:
                # TODO(synk): weights too large to stay resident in VMEM on
                # this generation (e.g. bf16 D=2048/H=8192 on v7x); stream
                # (Dp, h_chunk)/(h_chunk, Dp) weight tiles from HBM with
                # pltpu.emit_pipeline (memory_space=pl.ANY) instead.
                break

    # Padding (skipped entirely when already aligned).
    x2d_c = x2d.astype(x_in_dtype)
    x_p = x2d_c if (Np == N and Dp == D) else jnp.pad(x2d_c, ((0, Np - N), (0, Dp - D)))
    w1_p = w1 if (Dp == D and Hp == H) else jnp.pad(w1, ((0, Dp - D), (0, Hp - H)))
    w2_p = w2 if (Hp == H and Dp == D) else jnp.pad(w2, ((0, Hp - H), (0, Dp - D)))
    b1_p = b1.reshape(1, H)
    if Hp != H:
        b1_p = jnp.pad(b1_p, ((0, 0), (0, Hp - H)))
    b2_p = b2.reshape(1, D)
    if Dp != D:
        b2_p = jnp.pad(b2_p, ((0, 0), (0, Dp - D)))
    scale_arr = jnp.asarray(fractal_scale, jnp.float32).reshape(1)

    kernel = functools.partial(
        fractal_ff_kernel,
        iterative_layers=iterative_layers,
        h_chunk=h_chunk,
        approximate_gelu=approximate_gelu,
    )

    n_mlps = 1 + iterative_layers
    cost = pl.CostEstimate(
        flops=2 * Np * (Dp * Hp + Hp * Dp) * n_mlps,
        transcendentals=Np * Hp * n_mlps,
        bytes_accessed=((Dp * Hp + Hp * Dp + Hp + Dp) * w_bytes
                        + Np * Dp * (x_bytes + out_bytes)),
    )

    cp_kwargs = dict(dimension_semantics=("parallel",))
    if budget is not None:
        cp_kwargs["vmem_limit_bytes"] = budget

    out = pl.pallas_call(
        kernel,
        out_shape=jax.ShapeDtypeStruct((Np, Dp), x.dtype),
        grid_spec=pltpu.PrefetchScalarGridSpec(
            num_scalar_prefetch=0,
            grid=(Np // tile_m_sel,),
            in_specs=[
                pl.BlockSpec((tile_m_sel, Dp), lambda i: (i, 0)),   # x row tile (streamed)
                pl.BlockSpec((Dp, Hp), lambda i: (0, 0)),           # w1 (resident)
                pl.BlockSpec((1, Hp), lambda i: (0, 0)),            # b1 (resident)
                pl.BlockSpec((Hp, Dp), lambda i: (0, 0)),           # w2 (resident)
                pl.BlockSpec((1, Dp), lambda i: (0, 0)),            # b2 (resident)
                pl.BlockSpec(memory_space=pltpu.MemorySpace.SMEM),  # fractal_scale
            ],
            out_specs=pl.BlockSpec((tile_m_sel, Dp), lambda i: (i, 0)),
        ),
        compiler_params=pltpu.CompilerParams(**cp_kwargs),
        cost_estimate=cost,
    )(x_p, w1_p, b1_p, w2_p, b2_p, scale_arr)

    if Np != N or Dp != D:
        out = out[:N, :D]
    return out.reshape(orig_shape)


def fractal_feed_forward_ref(x, w1, b1, w2, b2, fractal_scale, iterative_layers=3):
    """Pure-JAX reference mirroring the PyTorch module."""
    def mlp(v):
        h = v @ w1 + b1
        h = 0.5 * h * (1.0 + jax.lax.erf(h * _SQRT_HALF))
        return h @ w2 + b2

    result = x + mlp(x) * fractal_scale
    for i in range(iterative_layers):
        result = result + mlp(result) * (fractal_scale / 2 ** (i + 1))
    return result


if __name__ == "__main__":
    # Small shapes: batch=2, seq=8, dim=32, mlp_ratio=4 -> hidden=128.
    B, S, D = 2, 8, 32
    mlp_ratio = 4
    H = D * mlp_ratio

    key = jax.random.PRNGKey(0)
    kx, k1, kb1, k2, kb2 = jax.random.split(key, 5)

    x = jax.random.normal(kx, (B, S, D), dtype=jnp.float32)

    # Deterministic parameter init (uniform like torch.nn.Linear default bounds).
    bound1 = 1.0 / math.sqrt(D)
    w1 = jax.random.uniform(k1, (D, H), jnp.float32, -bound1, bound1)
    b1 = jax.random.uniform(kb1, (H,), jnp.float32, -bound1, bound1)
    bound2 = 1.0 / math.sqrt(H)
    w2 = jax.random.uniform(k2, (H, D), jnp.float32, -bound2, bound2)
    b2 = jax.random.uniform(kb2, (D,), jnp.float32, -bound2, bound2)
    fractal_scale = jnp.float32(0.5)

    out = fractal_feed_forward(x, w1, b1, w2, b2, fractal_scale)
    out = jax.block_until_ready(out)

    ref = fractal_feed_forward_ref(x, w1, b1, w2, b2, fractal_scale)
    assert out.shape == x.shape and out.dtype == x.dtype
    err = jnp.max(jnp.abs(out - ref))
    assert jnp.allclose(out, ref, atol=2e-5, rtol=2e-5), f"max abs err {err}"

    print("KERNEL_OK")
</pallas_src>

<mosaic_0001>
module attributes {stable_mosaic.version = 11 : i64} {
  func.func @fractal_ff_kernel(%arg0: i32, %arg1: memref<128x128xf32, #tpu.memory_space<vmem>>, %arg2: memref<128x128xf32, #tpu.memory_space<vmem>>, %arg3: memref<1x128xf32, #tpu.memory_space<vmem>>, %arg4: memref<128x128xf32, #tpu.memory_space<vmem>>, %arg5: memref<1x128xf32, #tpu.memory_space<vmem>>, %arg6: memref<1xf32, #tpu.memory_space<smem>>, %arg7: memref<128x128xf32, #tpu.memory_space<vmem>>) attributes {dimension_semantics = [#tpu.dimension_semantics<parallel>], iteration_bounds = array<i64: 1>, scalar_prefetch = 0 : i64, scratch_operands = 0 : i64, tpu.core_type = #tpu.core_type<tc>, window_params = [{transform_indices = @transform_0, window_bounds = array<i64: 128, 128>}, {pipeline_mode = #tpu.pipeline_mode<synchronous>, transform_indices = @transform_1, window_bounds = array<i64: 128, 128>}, {pipeline_mode = #tpu.pipeline_mode<synchronous>, transform_indices = @transform_2, window_bounds = array<i64: 1, 128>}, {pipeline_mode = #tpu.pipeline_mode<synchronous>, transform_indices = @transform_3, window_bounds = array<i64: 128, 128>}, {pipeline_mode = #tpu.pipeline_mode<synchronous>, transform_indices = @transform_4, window_bounds = array<i64: 1, 128>}, {transform_indices = @transform_5, window_bounds = array<i64: 1>}, {transform_indices = @transform_6, window_bounds = array<i64: 128, 128>}]} {
    %c0 = arith.constant 0 : index
    %c0_0 = arith.constant 0 : index
    %0 = vector.load %arg3[%c0, %c0_0] : memref<1x128xf32, #tpu.memory_space<vmem>>, vector<1x128xf32>
    %c0_1 = arith.constant 0 : index
    %c0_2 = arith.constant 0 : index
    %1 = vector.load %arg5[%c0_1, %c0_2] : memref<1x128xf32, #tpu.memory_space<vmem>>, vector<1x128xf32>
    %c0_3 = arith.constant 0 : index
    %2 = memref.load %arg6[%c0_3] : memref<1xf32, #tpu.memory_space<smem>>
    %c0_4 = arith.constant 0 : index
    %c0_5 = arith.constant 0 : index
    %3 = vector.load %arg1[%c0_4, %c0_5] : memref<128x128xf32, #tpu.memory_space<vmem>>, vector<128x128xf32>
    %c0_6 = arith.constant 0 : index
    %c0_7 = arith.constant 0 : index
    %4 = vector.load %arg2[%c0_6, %c0_7] : memref<128x128xf32, #tpu.memory_space<vmem>>, vector<128x128xf32>
    %cst = arith.constant dense<0.000000e+00> : vector<128x128xf32>
    %5 = tpu.matmul %3, %4, %cst {dimension_numbers = #tpu.dot_dimension_numbers<[1], [0], [0], [1], [0, 0, 1, 1], [], []>} : vector<128x128xf32>, vector<128x128xf32>, vector<128x128xf32> -> vector<128x128xf32>
    %6 = vector.broadcast %0 : vector<1x128xf32> to vector<128x128xf32>
    %7 = arith.addf %5, %6 : vector<128x128xf32>
    %cst_8 = arith.constant 5.000000e-01 : f32
    %8 = vector.broadcast %cst_8 : f32 to vector<128x128xf32>
    %9 = arith.mulf %8, %7 : vector<128x128xf32>
    %cst_9 = arith.constant 0.707106769 : f32
    %10 = vector.broadcast %cst_9 : f32 to vector<128x128xf32>
    %11 = arith.mulf %7, %10 : vector<128x128xf32>
    %12 = math.erf %11 : vector<128x128xf32>
    %cst_10 = arith.constant 1.000000e+00 : f32
    %13 = vector.broadcast %cst_10 : f32 to vector<128x128xf32>
    %14 = arith.addf %13, %12 : vector<128x128xf32>
    %15 = arith.mulf %9, %14 : vector<128x128xf32>
    %c0_11 = arith.constant 0 : index
    %c0_12 = arith.constant 0 : index
    %16 = vector.load %arg4[%c0_11, %c0_12] : memref<128x128xf32, #tpu.memory_space<vmem>>, vector<128x128xf32>
    %cst_13 = arith.constant dense<0.000000e+00> : vector<128x128xf32>
    %17 = tpu.matmul %15, %16, %cst_13 {dimension_numbers = #tpu.dot_dimension_numbers<[1], [0], [0], [1], [0, 0, 1, 1], [], []>} : vector<128x128xf32>, vector<128x128xf32>, vector<128x128xf32> -> vector<128x128xf32>
    %18 = vector.broadcast %1 : vector<1x128xf32> to vector<128x128xf32>
    %19 = arith.addf %17, %18 : vector<128x128xf32>
    %20 = vector.broadcast %2 : f32 to vector<128x128xf32>
    %21 = arith.mulf %19, %20 : vector<128x128xf32>
    %22 = arith.addf %3, %21 : vector<128x128xf32>
    %c0_14 = arith.constant 0 : index
    %c0_15 = arith.constant 0 : index
    %23 = vector.load %arg2[%c0_14, %c0_15] : memref<128x128xf32, #tpu.memory_space<vmem>>, vector<128x128xf32>
    %cst_16 = arith.constant dense<0.000000e+00> : vector<128x128xf32>
    %24 = tpu.matmul %22, %23, %cst_16 {dimension_numbers = #tpu.dot_dimension_numbers<[1], [0], [0], [1], [0, 0, 1, 1], [], []>} : vector<128x128xf32>, vector<128x128xf32>, vector<128x128xf32> -> vector<128x128xf32>
    %25 = vector.broadcast %0 : vector<1x128xf32> to vector<128x128xf32>
    %26 = arith.addf %24, %25 : vector<128x128xf32>
    %cst_17 = arith.constant 5.000000e-01 : f32
    %27 = vector.broadcast %cst_17 : f32 to vector<128x128xf32>
    %28 = arith.mulf %27, %26 : vector<128x128xf32>
    %cst_18 = arith.constant 0.707106769 : f32
    %29 = vector.broadcast %cst_18 : f32 to vector<128x128xf32>
    %30 = arith.mulf %26, %29 : vector<128x128xf32>
    %31 = math.erf %30 : vector<128x128xf32>
    %cst_19 = arith.constant 1.000000e+00 : f32
    %32 = vector.broadcast %cst_19 : f32 to vector<128x128xf32>
    %33 = arith.addf %32, %31 : vector<128x128xf32>
    %34 = arith.mulf %28, %33 : vector<128x128xf32>
    %c0_20 = arith.constant 0 : index
    %c0_21 = arith.constant 0 : index
    %35 = vector.load %arg4[%c0_20, %c0_21] : memref<128x128xf32, #tpu.memory_space<vmem>>, vector<128x128xf32>
    %cst_22 = arith.constant dense<0.000000e+00> : vector<128x128xf32>
    %36 = tpu.matmul %34, %35, %cst_22 {dimension_numbers = #tpu.dot_dimension_numbers<[1], [0], [0], [1], [0, 0, 1, 1], [], []>} : vector<128x128xf32>, vector<128x128xf32>, vector<128x128xf32> -> vector<128x128xf32>
    %37 = vector.broadcast %1 : vector<1x128xf32> to vector<128x128xf32>
    %38 = arith.addf %36, %37 : vector<128x128xf32>
    %cst_23 = arith.constant 2.000000e+00 : f32
    %39 = arith.divf %2, %cst_23 : f32
    %40 = vector.broadcast %39 : f32 to vector<128x128xf32>
    %41 = arith.mulf %38, %40 : vector<128x128xf32>
    %42 = arith.addf %22, %41 : vector<128x128xf32>
    %c0_24 = arith.constant 0 : index
    %c0_25 = arith.constant 0 : index
    %43 = vector.load %arg2[%c0_24, %c0_25] : memref<128x128xf32, #tpu.memory_space<vmem>>, vector<128x128xf32>
    %cst_26 = arith.constant dense<0.000000e+00> : vector<128x128xf32>
    %44 = tpu.matmul %42, %43, %cst_26 {dimension_numbers = #tpu.dot_dimension_numbers<[1], [0], [0], [1], [0, 0, 1, 1], [], []>} : vector<128x128xf32>, vector<128x128xf32>, vector<128x128xf32> -> vector<128x128xf32>
    %45 = vector.broadcast %0 : vector<1x128xf32> to vector<128x128xf32>
    %46 = arith.addf %44, %45 : vector<128x128xf32>
    %cst_27 = arith.constant 5.000000e-01 : f32
    %47 = vector.broadcast %cst_27 : f32 to vector<128x128xf32>
    %48 = arith.mulf %47, %46 : vector<128x128xf32>
    %cst_28 = arith.constant 0.707106769 : f32
    %49 = vector.broadcast %cst_28 : f32 to vector<128x128xf32>
    %50 = arith.mulf %46, %49 : vector<128x128xf32>
    %51 = math.erf %50 : vector<128x128xf32>
    %cst_29 = arith.constant 1.000000e+00 : f32
    %52 = vector.broadcast %cst_29 : f32 to vector<128x128xf32>
    %53 = arith.addf %52, %51 : vector<128x128xf32>
    %54 = arith.mulf %48, %53 : vector<128x128xf32>
    %c0_30 = arith.constant 0 : index
    %c0_31 = arith.constant 0 : index
    %55 = vector.load %arg4[%c0_30, %c0_31] : memref<128x128xf32, #tpu.memory_space<vmem>>, vector<128x128xf32>
    %cst_32 = arith.constant dense<0.000000e+00> : vector<128x128xf32>
    %56 = tpu.matmul %54, %55, %cst_32 {dimension_numbers = #tpu.dot_dimension_numbers<[1], [0], [0], [1], [0, 0, 1, 1], [], []>} : vector<128x128xf32>, vector<128x128xf32>, vector<128x128xf32> -> vector<128x128xf32>
    %57 = vector.broadcast %1 : vector<1x128xf32> to vector<128x128xf32>
    %58 = arith.addf %56, %57 : vector<128x128xf32>
    %cst_33 = arith.constant 4.000000e+00 : f32
    %59 = arith.divf %2, %cst_33 : f32
    %60 = vector.broadcast %59 : f32 to vector<128x128xf32>
    %61 = arith.mulf %58, %60 : vector<128x128xf32>
    %62 = arith.addf %42, %61 : vector<128x128xf32>
    %c0_34 = arith.constant 0 : index
    %c0_35 = arith.constant 0 : index
    %63 = vector.load %arg2[%c0_34, %c0_35] : memref<128x128xf32, #tpu.memory_space<vmem>>, vector<128x128xf32>
    %cst_36 = arith.constant dense<0.000000e+00> : vector<128x128xf32>
    %64 = tpu.matmul %62, %63, %cst_36 {dimension_numbers = #tpu.dot_dimension_numbers<[1], [0], [0], [1], [0, 0, 1, 1], [], []>} : vector<128x128xf32>, vector<128x128xf32>, vector<128x128xf32> -> vector<128x128xf32>
    %65 = vector.broadcast %0 : vector<1x128xf32> to vector<128x128xf32>
    %66 = arith.addf %64, %65 : vector<128x128xf32>
    %cst_37 = arith.constant 5.000000e-01 : f32
    %67 = vector.broadcast %cst_37 : f32 to vector<128x128xf32>
    %68 = arith.mulf %67, %66 : vector<128x128xf32>
    %cst_38 = arith.constant 0.707106769 : f32
    %69 = vector.broadcast %cst_38 : f32 to vector<128x128xf32>
    %70 = arith.mulf %66, %69 : vector<128x128xf32>
    %71 = math.erf %70 : vector<128x128xf32>
    %cst_39 = arith.constant 1.000000e+00 : f32
    %72 = vector.broadcast %cst_39 : f32 to vector<128x128xf32>
    %73 = arith.addf %72, %71 : vector<128x128xf32>
    %74 = arith.mulf %68, %73 : vector<128x128xf32>
    %c0_40 = arith.constant 0 : index
    %c0_41 = arith.constant 0 : index
    %75 = vector.load %arg4[%c0_40, %c0_41] : memref<128x128xf32, #tpu.memory_space<vmem>>, vector<128x128xf32>
    %cst_42 = arith.constant dense<0.000000e+00> : vector<128x128xf32>
    %76 = tpu.matmul %74, %75, %cst_42 {dimension_numbers = #tpu.dot_dimension_numbers<[1], [0], [0], [1], [0, 0, 1, 1], [], []>} : vector<128x128xf32>, vector<128x128xf32>, vector<128x128xf32> -> vector<128x128xf32>
    %77 = vector.broadcast %1 : vector<1x128xf32> to vector<128x128xf32>
    %78 = arith.addf %76, %77 : vector<128x128xf32>
    %cst_43 = arith.constant 8.000000e+00 : f32
    %79 = arith.divf %2, %cst_43 : f32
    %80 = vector.broadcast %79 : f32 to vector<128x128xf32>
    %81 = arith.mulf %78, %80 : vector<128x128xf32>
    %82 = arith.addf %62, %81 : vector<128x128xf32>
    %c0_44 = arith.constant 0 : index
    %c0_45 = arith.constant 0 : index
    %83 = vector.load %arg7[%c0_44, %c0_45] : memref<128x128xf32, #tpu.memory_space<vmem>>, vector<128x128xf32>
    tpu.vector_store %arg7[%c0_44, %c0_45], %82 {strides = array<i32>} : memref<128x128xf32, #tpu.memory_space<vmem>>, vector<128x128xf32>,
    return
  }
  func.func @transform_0(%arg0: i32) -> (i32, i32) {
    %c0_i32 = arith.constant 0 : i32
    %c0_i32_0 = arith.constant 0 : i32
    return %arg0, %c0_i32 : i32, i32
  }
  func.func @transform_1(%arg0: i32) -> (i32, i32) {
    %c0_i32 = arith.constant 0 : i32
    %c0_i32_0 = arith.constant 0 : i32
    %c0_i32_1 = arith.constant 0 : i32
    return %c0_i32, %c0_i32_0 : i32, i32
  }
  func.func @transform_2(%arg0: i32) -> (i32, i32) {
    %c0_i32 = arith.constant 0 : i32
    %c0_i32_0 = arith.constant 0 : i32
    %c0_i32_1 = arith.constant 0 : i32
    return %c0_i32, %c0_i32_0 : i32, i32
  }
  func.func @transform_3(%arg0: i32) -> (i32, i32) {
    %c0_i32 = arith.constant 0 : i32
    %c0_i32_0 = arith.constant 0 : i32
    %c0_i32_1 = arith.constant 0 : i32
    return %c0_i32, %c0_i32_0 : i32, i32
  }
  func.func @transform_4(%arg0: i32) -> (i32, i32) {
    %c0_i32 = arith.constant 0 : i32
    %c0_i32_0 = arith.constant 0 : i32
    %c0_i32_1 = arith.constant 0 : i32
    return %c0_i32, %c0_i32_0 : i32, i32
  }
  func.func @transform_5(%arg0: i32) -> i32 {
    %c0_i32 = arith.constant 0 : i32
    %c0_i32_0 = arith.constant 0 : i32
    return %c0_i32 : i32
  }
  func.func @transform_6(%arg0: i32) -> (i32, i32) {
    %c0_i32 = arith.constant 0 : i32
    %c0_i32_0 = arith.constant 0 : i32
    return %arg0, %c0_i32 : i32, i32
  }
}

</mosaic_0001>

<bundles_post_ra>
// kernel: tpu_custom_call.1
= control target key start
LH: loop header
LB: loop body
LE: loop exit
PB: predicated region body
PF: predicated region fallthrough
CT: control target
= control target key end

     0   :  { %12 = vsyncpa [#allocation4], 0  ;;  %s3816_s0 = inlined_call_operand.hbm [shape: f32[128,128], index: 0, kind: input, shape index: {}]   ;;  %s3817_s1 = inlined_call_operand.hbm [shape: f32[128,128], index: 1, kind: input, shape index: {}]   ;;  %s3818_s2 = inlined_call_operand.vmem [shape: f32[1,128], index: 2, kind: input, shape index: {}]   ;;  %s3819_s3 = inlined_call_operand.hbm [shape: f32[128,128], index: 3, kind: input, shape index: {}]   ;;  %s3820_s4 = inlined_call_operand.vmem [shape: f32[1,128], index: 4, kind: input, shape index: {}]   ;;  %s3821_s5 = inlined_call_operand.<no memory space> [shape: f32[1], index: 5, kind: input, shape index: {}]   ;;  %s3822_s6 = inlined_call_operand.hbm [shape: f32[128,128], index: 6, kind: output, shape index: {}]  }
   0x1   :  { %13 = vsyncpa [#allocation7], 0 }
   0x2   :  { %14 = vsyncpa [#allocation5], 0  ;;  %s2976_s21 = smov [#allocation6]   ;;  %s2977_s23 = smov [#allocation3]  }
   0x3   :  { %s32_s22 = sshll.u32 %s2976_s21, 4  ;;  %s20_s24 = sshll.u32 %s2977_s23, 4  ;;  %s33_s22 = int_to_ptr.vmem [resolvable:$true] %s32_s22  ;;  %s3017_s24 = int_to_ptr.vmem [resolvable:$true] %s20_s24 }
   0x4   :  { %s2882_s27 = scalar_lea.hbm %s3817_s1, 2048 }
   0x5   :  { %p2883_p0 = scmp.ne.s32.totalorder %s3817_s1, %s2882_s27  ;;  %p2886_p1 = scmp.lt.u32.totalorder %s2882_s27, %s3817_s1 }
   0x7   :  { %p2888_p2 = pnand %p2886_p1, %p2883_p0 }
   0x9   :  { %2891 = shalt.err (!%p2888_p2)
}
   0xa   :  { %s2892_s8 = scalar_lea.vmem %s33_s22, 2048  ;;  %p2897_p4 = scmp.lt.s32.totalorder %s33_s22, %s33_s22 }
   0xb   :  { %p2893_p3 = scmp.ne.s32.totalorder %s33_s22, %s2892_s8  ;;  %p2898_p5 = scmp.lt.s32.totalorder %s2892_s8, %s2892_s8 }
   0xd   :  { %p2899_p6 = por %p2898_p5, %p2897_p4 }
   0xf   :  { %p2900_p7 = pnand %p2899_p6, %p2893_p3 }
  0x11   :  { %2903 = shalt.err (!%p2900_p7)
}
  0x12   :  { %s2978_s9 = smov 128   ;;  %s2979_s10 = smov 8  }
  0x13   :  { %38 = dma.hbm_to_vmem [thread:$0]  %s3817_s1, 2048, %s33_s22, [#allocation7], %s2978_s9, %s2978_s9, %s2979_s10  }
  0x14   :  { %s2904_s15 = scalar_lea.hbm %s3816_s0, 2048 }
  0x15   :  { %p2905_p8 = scmp.ne.s32.totalorder %s3816_s0, %s2904_s15  ;;  %p2908_p9 = scmp.lt.u32.totalorder %s2904_s15, %s3816_s0 }
  0x17   :  { %p2910_p10 = pnand %p2908_p9, %p2905_p8 }
  0x19   :  { %2913 = shalt.err (!%p2910_p10)
}
  0x1a   :  { %s2914_s20 = scalar_lea.vmem %s3017_s24, 2048  ;;  %p2919_p12 = scmp.lt.s32.totalorder %s3017_s24, %s3017_s24 }
  0x1b   :  { %p2915_p11 = scmp.ne.s32.totalorder %s3017_s24, %s2914_s20  ;;  %p2920_p13 = scmp.lt.s32.totalorder %s2914_s20, %s2914_s20 }
  0x1d   :  { %p2921_p0 = por %p2920_p13, %p2919_p12 }
  0x1f   :  { %p2922_p1 = pnand %p2921_p0, %p2915_p11 }
  0x21   :  { %2925 = shalt.err (!%p2922_p1)
}
  0x22   :  { %26 = dma.hbm_to_vmem [thread:$0]  %s3816_s0, 2048, %s3017_s24, [#allocation4], %s2978_s9, %s2978_s9, %s2979_s10  }
  0x23   :  { %s2980_s22 = smov [#allocation8]   ;;  %s2926_s27 = scalar_lea.hbm %s3819_s3, 2048 }
  0x24   :  { %s46_s23 = sshll.u32 %s2980_s22, 4  ;;  %p2927_p2 = scmp.ne.s32.totalorder %s3819_s3, %s2926_s27  ;;  %s47_s23 = int_to_ptr.vmem [resolvable:$true] %s46_s23 }
  0x25   :  { %p2930_p3 = scmp.lt.u32.totalorder %s2926_s27, %s3819_s3 }
  0x27   :  { %p2932_p4 = pnand %p2930_p3, %p2927_p2 }
  0x29   :  { %2935 = shalt.err (!%p2932_p4)
}
  0x2a   :  { %s2936_s8 = scalar_lea.vmem %s47_s23, 2048  ;;  %p2941_p6 = scmp.lt.s32.totalorder %s47_s23, %s47_s23 }
  0x2b   :  { %p2937_p5 = scmp.ne.s32.totalorder %s47_s23, %s2936_s8  ;;  %p2942_p7 = scmp.lt.s32.totalorder %s2936_s8, %s2936_s8 }
  0x2d   :  { %p2943_p8 = por %p2942_p7, %p2941_p6 }
  0x2f   :  { %p2944_p9 = pnand %p2943_p8, %p2937_p5 }
  0x31   :  { %2947 = shalt.err (!%p2944_p9)
}
  0x32   :  { %52 = dma.hbm_to_vmem [thread:$0]  %s3819_s3, 2048, %s47_s23, [#allocation7], %s2978_s9, %s2978_s9, %s2979_s10  }
  0x33   :  { %2970 = dma.done.wait [#allocation4], 2048  }
  0x34   :  { %2971 = vsyncadd [#allocation4], 4294965248 }
  0x35   :  { %2972 = dma.done.wait [#allocation7], 4096  }
  0x36   :  { %2973 = vsyncadd [#allocation7], 4294963200  ;;  %v85_v0 = vld [vmem:[#allocation6] sm:$0xff]  ;;  %v86_v1 = vld [vmem:[#allocation6 + $0x8] sm:$0xff]  ;;  %s904_s18 = smul.f32 0.5, %s3821_s5 }
  0x37   :  { %v87_v2 = vld [vmem:[#allocation6 + $0x10] sm:$0xff]  ;;  %v3069_v3 = vpack.c.bf16 %v86_v1, %v85_v0  ;;  %v88_v4 = vld [vmem:[#allocation6 + $0x18] sm:$0xff]  ;;  %v89_v6 = vld [vmem:[#allocation6 + $0x20] sm:$0xff]  ;;  %s1310_s21 = smul.f32 0.25, %s3821_s5 }
  0x38   :  { %v3071_v5 = vpack.c.bf16 %v88_v4, %v87_v2  ;;  %v90_v7 = vld [vmem:[#allocation6 + $0x28] sm:$0xff]  ;;  %v3078_v9 = vld [vmem:[#allocation3] sm:$0xff]  ;;  %v91_v10 = vld [vmem:[#allocation6 + $0x30] sm:$0xff]  ;;  %s1716_s26 = smul.f32 0.125, %s3821_s5 }
  0x39   :  { %2491 = vmatprep.subr.bf16.mxu0 %v3069_v3  ;;  %v3076_v8 = vpack.c.bf16 %v90_v7, %v89_v6  ;;  %v92_v11 = vld [vmem:[#allocation6 + $0x38] sm:$0xff]  ;;  %2074 = vmatprep.mubr.f32.mxu0 %v3078_v9  ;;  %v93_v13 = vld [vmem:[#allocation6 + $0x40] sm:$0xff]  ;;  %v94_v14 = vld [vmem:[#allocation6 + $0x48] sm:$0xff] }
  0x3a   :  { %2493 = vmatpush3.bf16.msra.mxu0 %v3069_v3  ;;  %v3083_v12 = vpack.c.bf16 %v92_v11, %v91_v10  ;;  %v332_v15 = vld [vmem:[#allocation8] sm:$0xff]  ;;  %v333_v16 = vld [vmem:[#allocation8 + $0x8] sm:$0xff]  ;;  %v334_v17 = vld [vmem:[#allocation8 + $0x10] sm:$0xff]  ;;  %v3091_v21 = vpack.c.bf16 %v94_v14, %v93_v13 }
  0x3b   :  { %2495 = vmatprep.subr.bf16.mxu0 %v3071_v5  ;;  %v335_v18 = vld [vmem:[#allocation8 + $0x18] sm:$0xff]  ;;  %v3086_v19 = vpack.c.bf16 %v333_v16, %v332_v15  ;;  %v336_v22 = vld [vmem:[#allocation8 + $0x20] sm:$0xff]  ;;  %v337_v23 = vld [vmem:[#allocation8 + $0x28] sm:$0xff] }
  0x3c   :  { %v3088_v20 = vpack.c.bf16 %v335_v18, %v334_v17  ;;  %v95_v24 = vld [vmem:[#allocation6 + $0x50] sm:$0xff]  ;;  %v96_v25 = vld [vmem:[#allocation6 + $0x58] sm:$0xff]  ;;  %v3097_v26 = vpack.c.bf16 %v337_v23, %v336_v22  ;;  %v97_v28 = vld [vmem:[#allocation6 + $0x60] sm:$0xff] }
  0x3d   :  { %2523 = vmatprep.subr.bf16.mxu1 %v3086_v19  ;;  %v3100_v27 = vpack.c.bf16 %v96_v25, %v95_v24  ;;  %v98_v29 = vld [vmem:[#allocation6 + $0x68] sm:$0xff]  ;;  %v99_v31 = vld [vmem:[#allocation6 + $0x70] sm:$0xff]  ;;  %v100_v32 = vld [vmem:[#allocation6 + $0x78] sm:$0xff] }
  0x3e   :  { %2497 = vmatpush3.bf16.msra.mxu0 %v3071_v5  ;;  %2525 = vmatpush3.bf16.msra.mxu1 %v3086_v19  ;;  %v3106_v30 = vpack.c.bf16 %v98_v29, %v97_v28  ;;  %v3111_v33 = vpack.c.bf16 %v100_v32, %v99_v31  ;;  %v3116_v34 = vld [vmem:[#allocation3 + $0x8] sm:$0xff]  ;;  %v3118_v35 = vld [vmem:[#allocation3 + $0x10] sm:$0xff]  ;;  %v3123_v36 = vld [vmem:[#allocation3 + $0x18] sm:$0xff] }
  0x3f   :  { %2499 = vmatprep.subr.bf16.mxu0 %v3076_v8  ;;  %2527 = vmatprep.subr.bf16.mxu1 %v3088_v20  ;;  %v3126_v37 = vld [vmem:[#allocation3 + $0x20] sm:$0xff]  ;;  %v3131_v38 = vld [vmem:[#allocation3 + $0x28] sm:$0xff]  ;;  %v3134_v39 = vld [vmem:[#allocation3 + $0x30] sm:$0xff] }
  0x40   :  { %v3139_v40 = vld [vmem:[#allocation3 + $0x38] sm:$0xff]  ;;  %v3142_v41 = vld [vmem:[#allocation3 + $0x40] sm:$0xff]  ;;  %v3147_v42 = vld [vmem:[#allocation3 + $0x48] sm:$0xff] }
  0x41   :  { %v3150_v43 = vld [vmem:[#allocation3 + $0x50] sm:$0xff]  ;;  %v3155_v44 = vld [vmem:[#allocation3 + $0x58] sm:$0xff]  ;;  %v3158_v45 = vld [vmem:[#allocation3 + $0x60] sm:$0xff] }
  0x42   :  { %2501 = vmatpush3.bf16.msra.mxu0 %v3076_v8  ;;  %2529 = vmatpush3.bf16.msra.mxu1 %v3088_v20  ;;  %v3163_v46 = vld [vmem:[#allocation3 + $0x68] sm:$0xff]  ;;  %v3166_v47 = vld [vmem:[#allocation3 + $0x70] sm:$0xff]  ;;  %v3171_v48 = vld [vmem:[#allocation3 + $0x78] sm:$0xff] }
  0x43   :  { %2503 = vmatprep.subr.bf16.mxu0 %v3083_v12  ;;  %2531 = vmatprep.subr.bf16.mxu1 %v3097_v26  ;;  %v338_v49 = vld [vmem:[#allocation8 + $0x30] sm:$0xff]  ;;  %v339_v50 = vld [vmem:[#allocation8 + $0x38] sm:$0xff]  ;;  %v340_v52 = vld [vmem:[#allocation8 + $0x40] sm:$0xff] }
  0x44   :  { %v3178_v51 = vpack.c.bf16 %v339_v50, %v338_v49  ;;  %v341_v53 = vld [vmem:[#allocation8 + $0x48] sm:$0xff]  ;;  %v342_v55 = vld [vmem:[#allocation8 + $0x50] sm:$0xff]  ;;  %v343_v56 = vld [vmem:[#allocation8 + $0x58] sm:$0xff] }
  0x45   :  { %v3182_v54 = vpack.c.bf16 %v341_v53, %v340_v52  ;;  %v3186_v57 = vpack.c.bf16 %v343_v56, %v342_v55  ;;  %v344_v58 = vld [vmem:[#allocation8 + $0x60] sm:$0xff]  ;;  %v345_v59 = vld [vmem:[#allocation8 + $0x68] sm:$0xff]  ;;  %v346_v61 = vld [vmem:[#allocation8 + $0x70] sm:$0xff] }
  0x46   :  { %2505 = vmatpush3.bf16.msra.mxu0 %v3083_v12  ;;  %2533 = vmatpush3.bf16.msra.mxu1 %v3097_v26  ;;  %v3190_v60 = vpack.c.bf16 %v345_v59, %v344_v58  ;;  %v347_v62 = vld [vmem:[#allocation8 + $0x78] sm:$0xff]  ;;  %v3202_v0 = vld [vmem:[%s3818_s2] ss:$0 sm:$0xff] }
  0x47   :  { %2507 = vmatprep.subr.bf16.mxu0 %v3091_v21  ;;  %2535 = vmatprep.subr.bf16.mxu1 %v3178_v51  ;;  %v3194_v63 = vpack.c.bf16 %v347_v62, %v346_v61 }
  0x4a   :  { %2509 = vmatpush3.bf16.msra.mxu0 %v3091_v21  ;;  %2537 = vmatpush3.bf16.msra.mxu1 %v3178_v51 }
  0x4b   :  { %2511 = vmatprep.subr.bf16.mxu0 %v3100_v27  ;;  %2539 = vmatprep.subr.bf16.mxu1 %v3182_v54 }
  0x4e   :  { %2513 = vmatpush3.bf16.msra.mxu0 %v3100_v27  ;;  %2541 = vmatpush3.bf16.msra.mxu1 %v3182_v54 }
  0x4f   :  { %2515 = vmatprep.subr.bf16.mxu0 %v3106_v30  ;;  %2543 = vmatprep.subr.bf16.mxu1 %v3186_v57 }
  0x52   :  { %2517 = vmatpush3.bf16.msra.mxu0 %v3106_v30  ;;  %2545 = vmatpush3.bf16.msra.mxu1 %v3186_v57 }
  0x53   :  { %2519 = vmatprep.subr.bf16.mxu0 %v3111_v33  ;;  %2547 = vmatprep.subr.bf16.mxu1 %v3190_v60 }
  0x56   :  { %2521 = vmatpush3.bf16.msra.mxu0 %v3111_v33  ;;  %2549 = vmatpush3.bf16.msra.mxu1 %v3190_v60 }
  0x57   :  { %2555 = vmatprep.subr.bf16.mxu0 %v3069_v3  ;;  %2551 = vmatprep.subr.bf16.mxu1 %v3194_v63 }
  0x59   :  { %2075 = vmatmul.mubr.f32.vlgmr.msra.gmra.mrb[0].mxu0 %v3116_v34 }
  0x5a   :  { %2077 = vmatprep.mubr.f32.mxu0 %v3118_v35  ;;  %2557 = vmatpush3.bf16.msra.mxu0 %v3069_v3 }
  0x5b   :  { %2559 = vmatprep.subr.bf16.mxu0 %v3071_v5  ;;  %2553 = vmatpush3.bf16.msra.mxu1 %v3194_v63 }
  0x5c   :  { %2587 = vmatprep.subr.bf16.mxu1 %v3086_v19 }
  0x5d   :  { %2078 = vmatmul.mubr.f32.gmra.mrb[2].mxu0 %v3123_v36 }
  0x5e   :  { %2080 = vmatprep.mubr.f32.mxu0 %v3126_v37  ;;  %2561 = vmatpush3.bf16.msra.mxu0 %v3071_v5 }
  0x5f   :  { %2563 = vmatprep.subr.bf16.mxu0 %v3076_v8 }
  0x61   :  { %2081 = vmatmul.mubr.f32.gmra.mrb[4].mxu0 %v3131_v38 }
  0x62   :  { %2083 = vmatprep.mubr.f32.mxu0 %v3134_v39  ;;  %2565 = vmatpush3.bf16.msra.mxu0 %v3076_v8 }
  0x63   :  { %2567 = vmatprep.subr.bf16.mxu0 %v3083_v12 }
  0x65   :  { %2084 = vmatmul.mubr.f32.gmra.mrb[6].mxu0 %v3139_v40 }
  0x66   :  { %2086 = vmatprep.mubr.f32.mxu0 %v3142_v41  ;;  %2569 = vmatpush3.bf16.msra.mxu0 %v3083_v12 }
  0x67   :  { %2571 = vmatprep.subr.bf16.mxu0 %v3091_v21 }
  0x69   :  { %2087 = vmatmul.mubr.f32.gmra.mrb[8].mxu0 %v3147_v42 }
  0x6a   :  { %2089 = vmatprep.mubr.f32.mxu0 %v3150_v43  ;;  %2573 = vmatpush3.bf16.msra.mxu0 %v3091_v21 }
  0x6b   :  { %2575 = vmatprep.subr.bf16.mxu0 %v3100_v27 }
  0x6d   :  { %2090 = vmatmul.mubr.f32.gmra.mrb[10].mxu0 %v3155_v44 }
  0x6e   :  { %2092 = vmatprep.mubr.f32.mxu0 %v3158_v45  ;;  %2577 = vmatpush3.bf16.msra.mxu0 %v3100_v27 }
  0x6f   :  { %2579 = vmatprep.subr.bf16.mxu0 %v3106_v30 }
  0x71   :  { %2093 = vmatmul.mubr.f32.gmra.mrb[12].mxu0 %v3163_v46 }
  0x72   :  { %2095 = vmatprep.mubr.f32.mxu0 %v3166_v47  ;;  %2581 = vmatpush3.bf16.msra.mxu0 %v3106_v30 }
  0x73   :  { %2583 = vmatprep.subr.bf16.mxu0 %v3111_v33 }
  0x75   :  { %2096 = vmatmul.mubr.f32.gmra.mrb[14].mxu0 %v3171_v48 }
  0x76   :  { %2585 = vmatpush3.bf16.msra.mxu0 %v3111_v33 }
  0x77   :  { %2619 = vmatprep.subr.bf16.mxu0 %v3069_v3 }
 0x12c   :  { %v2076_v1 = vpop.f32.mrb[0].mxu0 }
 0x12d   :  { %v179_v2 = vadd.f32 %v2076_v1, %v3202_v0  ;;  %v173_v4 = vpop.f32.mrb[1].mxu0 }
 0x12e   :  { %v174_v6 = vadd.f32 %v3202_v0, %v173_v4 }
 0x12f   :  { %v269_v7 = vmul.f32 0.70710677, %v179_v2  ;;  %v253_v4 = vmul.f32 0.5, %v179_v2 }
 0x130   :  { %v268_v10 = vmul.f32 0.70710677, %v174_v6  ;;  %v2079_v11 = vpop.f32.mrb[2].mxu0  ;;  %v252_v62 = vmul.f32 0.5, %v174_v6 }
 0x131   :  { %2752 = verf.f32 %v269_v7  ;;  %v189_v13 = vadd.f32 %v2079_v11, %v3202_v0  ;;  %v183_v14 = vpop.f32.mrb[3].mxu0 }
 0x132   :  { %2754 = verf.f32 %v268_v10  ;;  %v184_v15 = vadd.f32 %v3202_v0, %v183_v14 }
 0x133   :  { %v271_v16 = vmul.f32 0.70710677, %v189_v13 }
 0x134   :  { %v270_v17 = vmul.f32 0.70710677, %v184_v15  ;;  %v2082_v18 = vpop.f32.mrb[4].mxu0 }
 0x135   :  { %2756 = verf.f32 %v271_v16  ;;  %v199_v22 = vadd.f32 %v2082_v18, %v3202_v0  ;;  %v193_v23 = vpop.f32.mrb[5].mxu0 }
 0x136   :  { %2758 = verf.f32 %v270_v17  ;;  %v194_v24 = vadd.f32 %v3202_v0, %v193_v23 }
 0x137   :  { %v273_v25 = vmul.f32 0.70710677, %v199_v22 }
 0x138   :  { %v272_v28 = vmul.f32 0.70710677, %v194_v24  ;;  %v2085_v29 = vpop.f32.mrb[6].mxu0 }
 0x139   :  { %2760 = verf.f32 %v273_v25  ;;  %v3211_v31 = vadd.f32 %v2085_v29, %v3202_v0  ;;  %v203_v32 = vpop.f32.mrb[7].mxu0 }
 0x13a   :  { %2762 = verf.f32 %v272_v28  ;;  %v204_v49 = vadd.f32 %v3202_v0, %v203_v32  ;;  %v254_v28 = vmul.f32 0.5, %v184_v15  ;;  %v255_v32 = vmul.f32 0.5, %v189_v13 }
 0x13b   :  { %v2753_v50 = vpop.eup %2752  ;;  %v275_v52 = vmul.f32 0.70710677, %v3211_v31  ;;  %v256_v13 = vmul.f32 0.5, %v194_v24 }
 0x13c   :  { %v2755_v53 = vpop.eup %2754  ;;  %v301_v55 = vadd.f32 1.0, %v2753_v50  ;;  %v274_v56 = vmul.f32 0.70710677, %v204_v49  ;;  %v2088_v58 = vpop.f32.mrb[8].mxu0 }
 0x13d   :  { %2764 = verf.f32 %v275_v52  ;;  %v3216_v59 = vadd.f32 %v2088_v58, %v3202_v0  ;;  %v213_v61 = vpop.f32.mrb[9].mxu0  ;;  %v300_v1 = vadd.f32 1.0, %v2755_v53 }
 0x13e   :  { %2766 = verf.f32 %v274_v56  ;;  %v3219_v7 = vadd.f32 %v3202_v0, %v213_v61  ;;  %v317_v25 = vmul.f32 %v301_v55, %v253_v4 }
 0x13f   :  { %v2757_v10 = vpop.eup %2756  ;;  %v277_v11 = vmul.f32 0.70710677, %v3216_v59  ;;  %v316_v14 = vmul.f32 %v300_v1, %v252_v62 }
 0x140   :  { %v2759_v16 = vpop.eup %2758  ;;  %v303_v17 = vadd.f32 1.0, %v2757_v10  ;;  %v276_v18 = vmul.f32 0.70710677, %v3219_v7  ;;  %v2091_v23 = vpop.f32.mrb[10].mxu0 }
 0x141   :  { %v302_v29 = vadd.f32 1.0, %v2759_v16  ;;  %2768 = verf.f32 %v277_v11  ;;  %v3224_v6 = vadd.f32 %v2091_v23, %v3202_v0  ;;  %v223_v2 = vpop.f32.mrb[11].mxu0  ;;  %2130 = vmatprep.mubr.f32.mxu1 %v316_v14  ;;  %v257_v11 = vmul.f32 0.5, %v199_v22 }
 0x142   :  { %2770 = verf.f32 %v276_v18  ;;  %v3227_v50 = vadd.f32 %v3202_v0, %v223_v2  ;;  %2131 = vmatmul.mubr.f32.vlgmr.msra.gmra.mrb[0].mxu1 %v317_v25  ;;  %v319_v62 = vmul.f32 %v303_v17, %v255_v32  ;;  %v258_v2 = vmul.f32 0.5, %v204_v49 }
 0x143   :  { %v2761_v52 = vpop.eup %2760  ;;  %v279_v53 = vmul.f32 0.70710677, %v3224_v6  ;;  %v318_v56 = vmul.f32 %v302_v29, %v254_v28  ;;  %2589 = vmatpush3.bf16.msra.mxu1 %v3086_v19 }
 0x144   :  { %v2763_v15 = vpop.eup %2762  ;;  %v305_v55 = vadd.f32 1.0, %v2761_v52  ;;  %v278_v58 = vmul.f32 0.70710677, %v3227_v50  ;;  %v2094_v61 = vpop.f32.mrb[12].mxu0  ;;  %2591 = vmatprep.subr.bf16.mxu1 %v3088_v20 }
 0x145   :  { %v304_v1 = vadd.f32 1.0, %v2763_v15  ;;  %2772 = verf.f32 %v279_v53  ;;  %v3234_v4 = vadd.f32 %v2094_v61, %v3202_v0  ;;  %v233_v10 = vpop.f32.mrb[13].mxu0  ;;  %2133 = vmatprep.mubr.f32.mxu1 %v318_v56  ;;  %v259_v53 = vmul.f32 0.5, %v3211_v31 }
 0x146   :  { %2774 = verf.f32 %v278_v58  ;;  %v234_v14 = vadd.f32 %v3202_v0, %v233_v10  ;;  %2134 = vmatmul.mubr.f32.gmra.mrb[2].mxu1 %v319_v62  ;;  %v321_v29 = vmul.f32 %v305_v55, %v257_v11  ;;  %v261_v31 = vmul.f32 0.5, %v3216_v59 }
 0x147   :  { %v2765_v16 = vpop.eup %2764  ;;  %v281_v18 = vmul.f32 0.70710677, %v3234_v4  ;;  %v320_v23 = vmul.f32 %v304_v1, %v256_v13  ;;  %2593 = vmatpush3.bf16.msra.mxu1 %v3088_v20  ;;  %v260_v1 = vmul.f32 0.5, %v3219_v7  ;;  %v263_v7 = vmul.f32 0.5, %v3224_v6 }
 0x148   :  { %v2767_v17 = vpop.eup %2766  ;;  %v307_v24 = vadd.f32 1.0, %v2765_v16  ;;  %v280_v25 = vmul.f32 0.70710677, %v234_v14  ;;  %v2097_v28 = vpop.f32.mrb[14].mxu0  ;;  %2595 = vmatprep.subr.bf16.mxu1 %v3097_v26 }
 0x149   :  { %v306_v32 = vadd.f32 1.0, %v2767_v17  ;;  %2776 = verf.f32 %v281_v18  ;;  %v249_v22 = vadd.f32 %v2097_v28, %v3202_v0  ;;  %v243_v52 = vpop.f32.mrb[15].mxu0  ;;  %2136 = vmatprep.mubr.f32.mxu1 %v320_v23 }
 0x14a   :  { %2778 = verf.f32 %v280_v25  ;;  %v244_v56 = vadd.f32 %v3202_v0, %v243_v52  ;;  %2137 = vmatmul.mubr.f32.gmra.mrb[4].mxu1 %v321_v29  ;;  %v323_v13 = vmul.f32 %v307_v24, %v259_v53  ;;  %v262_v24 = vmul.f32 0.5, %v3227_v50 }
 0x14b   :  { %v2769_v15 = vpop.eup %2768  ;;  %v283_v58 = vmul.f32 0.70710677, %v249_v22  ;;  %v322_v61 = vmul.f32 %v306_v32, %v258_v2  ;;  %2597 = vmatpush3.bf16.msra.mxu1 %v3097_v26  ;;  %v264_v52 = vmul.f32 0.5, %v234_v14 }
 0x14c   :  { %v2771_v55 = vpop.eup %2770  ;;  %v309_v62 = vadd.f32 1.0, %v2769_v15  ;;  %v282_v49 = vmul.f32 0.70710677, %v244_v56  ;;  %2599 = vmatprep.subr.bf16.mxu1 %v3178_v51  ;;  %v265_v15 = vmul.f32 0.5, %v3234_v4  ;;  %v3263_v4 = vld [vmem:[%s3820_s4] ss:$0 sm:$0xff] }
 0x14d   :  { %v308_v10 = vadd.f32 1.0, %v2771_v55  ;;  %2780 = verf.f32 %v283_v58  ;;  %2139 = vmatprep.mubr.f32.mxu1 %v322_v61 }
 0x14e   :  { %2782 = verf.f32 %v282_v49  ;;  %2140 = vmatmul.mubr.f32.gmra.mrb[6].mxu1 %v323_v13  ;;  %v325_v17 = vmul.f32 %v309_v62, %v261_v31  ;;  %v266_v62 = vmul.f32 0.5, %v244_v56  ;;  %v267_v13 = vmul.f32 0.5, %v249_v22 }
 0x14f   :  { %v2773_v11 = vpop.eup %2772  ;;  %v324_v16 = vmul.f32 %v308_v10, %v260_v1  ;;  %2601 = vmatpush3.bf16.msra.mxu1 %v3178_v51  ;;  %v3268_v22 = vstv %s3821_s5  ;;  %s2981_s5 = smov [#allocation9]  }
 0x150   :  { %v2775_v18 = vpop.eup %2774  ;;  %v311_v23 = vadd.f32 1.0, %v2773_v11  ;;  %2603 = vmatprep.subr.bf16.mxu1 %v3182_v54  ;;  %s1771_s27 = sshll.u32 %s2981_s5, 4  ;;  %s1772_s27 = int_to_ptr.vmem [resolvable:$true] %s1771_s27 }
 0x151   :  { %v310_v25 = vadd.f32 1.0, %v2775_v18  ;;  %2142 = vmatprep.mubr.f32.mxu1 %v324_v16  ;;  %s2948_s28 = scalar_lea.vmem %s1772_s27, 2048  ;;  %p2953_p11 = scmp.lt.s32.totalorder %s1772_s27, %s1772_s27 }
 0x152   :  { %2143 = vmatmul.mubr.f32.gmra.mrb[8].mxu1 %v325_v17  ;;  %v327_v32 = vmul.f32 %v311_v23, %v263_v7  ;;  %p2949_p10 = scmp.ne.s32.totalorder %s1772_s27, %s2948_s28  ;;  %p2954_p12 = scmp.lt.s32.totalorder %s2948_s28, %s2948_s28 }
 0x153   :  { %v2777_v28 = vpop.eup %2776  ;;  %v326_v59 = vmul.f32 %v310_v25, %v262_v24  ;;  %2605 = vmatpush3.bf16.msra.mxu1 %v3182_v54 }
 0x154   :  { %v2779_v29 = vpop.eup %2778  ;;  %v313_v2 = vadd.f32 1.0, %v2777_v28  ;;  %2607 = vmatprep.subr.bf16.mxu1 %v3186_v57  ;;  %p2955_p13 = por %p2954_p12, %p2953_p11 }
 0x155   :  { %v312_v53 = vadd.f32 1.0, %v2779_v29  ;;  %2145 = vmatprep.mubr.f32.mxu1 %v326_v59 }
 0x156   :  { %2146 = vmatmul.mubr.f32.gmra.mrb[10].mxu1 %v327_v32  ;;  %v329_v55 = vmul.f32 %v313_v2, %v265_v15  ;;  %p2956_p0 = pnand %p2955_p13, %p2949_p10 }
 0x157   :  { %v2781_v50 = vpop.eup %2780  ;;  %v328_v58 = vmul.f32 %v312_v53, %v264_v52  ;;  %2609 = vmatpush3.bf16.msra.mxu1 %v3186_v57 }
 0x158   :  { %v2783_v6 = vpop.eup %2782  ;;  %v315_v61 = vadd.f32 1.0, %v2781_v50  ;;  %2611 = vmatprep.subr.bf16.mxu1 %v3190_v60 }
 0x159   :  { %v314_v49 = vadd.f32 1.0, %v2783_v6  ;;  %2148 = vmatprep.mubr.f32.mxu1 %v328_v58 }
 0x15a   :  { %2149 = vmatmul.mubr.f32.gmra.mrb[12].mxu1 %v329_v55  ;;  %v331_v1 = vmul.f32 %v315_v61, %v267_v13 }
 0x15b   :  { %v330_v14 = vmul.f32 %v314_v49, %v266_v62  ;;  %2613 = vmatpush3.bf16.msra.mxu1 %v3190_v60 }
 0x15c   :  { %2615 = vmatprep.subr.bf16.mxu1 %v3194_v63 }
 0x15d   :  { %2151 = vmatprep.mubr.f32.mxu1 %v330_v14 }
 0x15e   :  { %2152 = vmatmul.mubr.f32.gmra.mrb[14].mxu1 %v331_v1 }
 0x15f   :  { %2617 = vmatpush3.bf16.msra.mxu1 %v3194_v63 }
 0x160   :  { %2651 = vmatprep.subr.bf16.mxu1 %v3086_v19 }
 0x215   :  { %v2132_v56 = vpop.f32.mrb[0].mxu1 }
 0x216   :  { %v426_v10 = vadd.f32 %v2132_v56, %v3263_v4  ;;  %v420_v31 = vpop.f32.mrb[1].mxu1 }
 0x217   :  { %v421_v11 = vadd.f32 %v3263_v4, %v420_v31 }
 0x218   :  { %v501_v16 = vmul.f32 %v3268_v22, %v426_v10 }
 0x219   :  { %v500_v18 = vmul.f32 %v3268_v22, %v421_v11  ;;  %v2135_v23 = vpop.f32.mrb[2].mxu1 }
 0x21a   :  { %v436_v17 = vadd.f32 %v2135_v23, %v3263_v4  ;;  %v430_v24 = vpop.f32.mrb[3].mxu1  ;;  %v3280_v28 = vadd.f32 %v501_v16, %v3116_v34 }
 0x21b   :  { %v431_v25 = vadd.f32 %v3263_v4, %v430_v24  ;;  %v3277_v7 = vadd.f32 %v500_v18, %v3078_v9 }
 0x21c   :  { %v503_v59 = vmul.f32 %v3268_v22, %v436_v17 }
 0x21d   :  { %v502_v29 = vmul.f32 %v3268_v22, %v431_v25  ;;  %v2138_v2 = vpop.f32.mrb[4].mxu1  ;;  %2186 = vmatprep.mubr.f32.mxu0 %v3277_v7 }
 0x21e   :  { %v446_v32 = vadd.f32 %v2138_v2, %v3263_v4  ;;  %v440_v52 = vpop.f32.mrb[5].mxu1  ;;  %2187 = vmatmul.mubr.f32.vlgmr.msra.gmra.mrb[16].mxu0 %v3280_v28  ;;  %v3294_v15 = vadd.f32 %v503_v59, %v3123_v36 }
 0x21f   :  { %v441_v53 = vadd.f32 %v3263_v4, %v440_v52  ;;  %v3289_v9 = vadd.f32 %v502_v29, %v3118_v35  ;;  %2621 = vmatpush3.bf16.msra.mxu0 %v3069_v3 }
 0x220   :  { %v505_v34 = vmul.f32 %v3268_v22, %v446_v32  ;;  %2623 = vmatprep.subr.bf16.mxu0 %v3071_v5 }
 0x221   :  { %v504_v50 = vmul.f32 %v3268_v22, %v441_v53  ;;  %v2141_v58 = vpop.f32.mrb[6].mxu1  ;;  %2189 = vmatprep.mubr.f32.mxu0 %v3289_v9 }
 0x222   :  { %v456_v6 = vadd.f32 %v2141_v58, %v3263_v4  ;;  %v450_v61 = vpop.f32.mrb[7].mxu1  ;;  %2190 = vmatmul.mubr.f32.gmra.mrb[18].mxu0 %v3294_v15  ;;  %v3308_v62 = vadd.f32 %v505_v34, %v3131_v38 }
 0x223   :  { %v451_v35 = vadd.f32 %v3263_v4, %v450_v61  ;;  %v3303_v55 = vadd.f32 %v504_v50, %v3126_v37  ;;  %2625 = vmatpush3.bf16.msra.mxu0 %v3071_v5 }
 0x224   :  { %v507_v36 = vmul.f32 %v3268_v22, %v456_v6  ;;  %2627 = vmatprep.subr.bf16.mxu0 %v3076_v8 }
 0x225   :  { %v506_v49 = vmul.f32 %v3268_v22, %v451_v35  ;;  %v2144_v13 = vpop.f32.mrb[8].mxu1  ;;  %2192 = vmatprep.mubr.f32.mxu0 %v3303_v55 }
 0x226   :  { %v466_v14 = vadd.f32 %v2144_v13, %v3263_v4  ;;  %v460_v1 = vpop.f32.mrb[9].mxu1  ;;  %2193 = vmatmul.mubr.f32.gmra.mrb[20].mxu0 %v3308_v62  ;;  %v3322_v10 = vadd.f32 %v507_v36, %v3139_v40 }
 0x227   :  { %v461_v37 = vadd.f32 %v3263_v4, %v460_v1  ;;  %v3317_v56 = vadd.f32 %v506_v49, %v3134_v39  ;;  %2629 = vmatpush3.bf16.msra.mxu0 %v3076_v8 }
 0x228   :  { %v509_v38 = vmul.f32 %v3268_v22, %v466_v14  ;;  %2631 = vmatprep.subr.bf16.mxu0 %v3083_v12 }
 0x229   :  { %v508_v31 = vmul.f32 %v3268_v22, %v461_v37  ;;  %v2147_v11 = vpop.f32.mrb[10].mxu1  ;;  %2195 = vmatprep.mubr.f32.mxu0 %v3317_v56 }
 0x22a   :  { %v476_v16 = vadd.f32 %v2147_v11, %v3263_v4  ;;  %v470_v18 = vpop.f32.mrb[11].mxu1  ;;  %2196 = vmatmul.mubr.f32.gmra.mrb[22].mxu0 %v3322_v10  ;;  %v3336_v17 = vadd.f32 %v509_v38, %v3147_v42 }
 0x22b   :  { %v471_v39 = vadd.f32 %v3263_v4, %v470_v18  ;;  %v3331_v23 = vadd.f32 %v508_v31, %v3142_v41  ;;  %2633 = vmatpush3.bf16.msra.mxu0 %v3083_v12 }
 0x22c   :  { %v511_v40 = vmul.f32 %v3268_v22, %v476_v16  ;;  %2635 = vmatprep.subr.bf16.mxu0 %v3091_v21 }
 0x22d   :  { %v510_v24 = vmul.f32 %v3268_v22, %v471_v39  ;;  %v2150_v25 = vpop.f32.mrb[12].mxu1  ;;  %2198 = vmatprep.mubr.f32.mxu0 %v3331_v23 }
 0x22e   :  { %v486_v59 = vadd.f32 %v2150_v25, %v3263_v4  ;;  %v480_v29 = vpop.f32.mrb[13].mxu1  ;;  %2199 = vmatmul.mubr.f32.gmra.mrb[24].mxu0 %v3336_v17  ;;  %v3350_v32 = vadd.f32 %v511_v40, %v3155_v44 }
 0x22f   :  { %v481_v41 = vadd.f32 %v3263_v4, %v480_v29  ;;  %v3345_v2 = vadd.f32 %v510_v24, %v3150_v43  ;;  %2637 = vmatpush3.bf16.msra.mxu0 %v3091_v21 }
 0x230   :  { %v513_v42 = vmul.f32 %v3268_v22, %v486_v59  ;;  %2639 = vmatprep.subr.bf16.mxu0 %v3100_v27 }
 0x231   :  { %v512_v52 = vmul.f32 %v3268_v22, %v481_v41  ;;  %v2153_v53 = vpop.f32.mrb[14].mxu1  ;;  %2201 = vmatprep.mubr.f32.mxu0 %v3345_v2 }
 0x232   :  { %v496_v34 = vadd.f32 %v2153_v53, %v3263_v4  ;;  %v490_v50 = vpop.f32.mrb[15].mxu1  ;;  %2202 = vmatmul.mubr.f32.gmra.mrb[26].mxu0 %v3350_v32  ;;  %v3364_v6 = vadd.f32 %v513_v42, %v3163_v46 }
 0x233   :  { %v491_v43 = vadd.f32 %v3263_v4, %v490_v50  ;;  %v3359_v58 = vadd.f32 %v512_v52, %v3158_v45  ;;  %2641 = vmatpush3.bf16.msra.mxu0 %v3100_v27 }
 0x234   :  { %v515_v44 = vmul.f32 %v3268_v22, %v496_v34  ;;  %2643 = vmatprep.subr.bf16.mxu0 %v3106_v30 }
 0x235   :  { %v514_v61 = vmul.f32 %v3268_v22, %v491_v43  ;;  %2204 = vmatprep.mubr.f32.mxu0 %v3359_v58 }
 0x236   :  { %2205 = vmatmul.mubr.f32.gmra.mrb[28].mxu0 %v3364_v6  ;;  %v3375_v45 = vadd.f32 %v515_v44, %v3171_v48 }
 0x237   :  { %v3371_v35 = vadd.f32 %v514_v61, %v3166_v47  ;;  %2645 = vmatpush3.bf16.msra.mxu0 %v3106_v30 }
 0x238   :  { %2647 = vmatprep.subr.bf16.mxu0 %v3111_v33 }
 0x239   :  { %2207 = vmatprep.mubr.f32.mxu0 %v3371_v35 }
 0x23a   :  { %2208 = vmatmul.mubr.f32.gmra.mrb[30].mxu0 %v3375_v45 }
 0x23b   :  { %2649 = vmatpush3.bf16.msra.mxu0 %v3111_v33 }
 0x23c   :  { %2683 = vmatprep.subr.bf16.mxu0 %v3069_v3 }
 0x2f1   :  { %v2188_v46 = vpop.f32.mrb[16].mxu0 }
 0x2f2   :  { %v604_v22 = vadd.f32 %v2188_v46, %v3202_v0  ;;  %v598_v47 = vpop.f32.mrb[17].mxu0 }
 0x2f3   :  { %v599_v36 = vadd.f32 %v3202_v0, %v598_v47 }
 0x2f4   :  { %v694_v49 = vmul.f32 0.70710677, %v604_v22 }
 0x2f5   :  { %v693_v13 = vmul.f32 0.70710677, %v599_v36  ;;  %v2191_v48 = vpop.f32.mrb[18].mxu0  ;;  %v677_v44 = vmul.f32 0.5, %v599_v36 }
 0x2f6   :  { %2784 = verf.f32 %v694_v49  ;;  %v614_v14 = vadd.f32 %v2191_v48, %v3202_v0  ;;  %v608_v1 = vpop.f32.mrb[19].mxu0  ;;  %v678_v49 = vmul.f32 0.5, %v604_v22 }
 0x2f7   :  { %2786 = verf.f32 %v693_v13  ;;  %v609_v37 = vadd.f32 %v3202_v0, %v608_v1 }
 0x2f8   :  { %v696_v38 = vmul.f32 0.70710677, %v614_v14 }
 0x2f9   :  { %v695_v31 = vmul.f32 0.70710677, %v609_v37  ;;  %v2194_v11 = vpop.f32.mrb[20].mxu0 }
 0x2fa   :  { %2788 = verf.f32 %v696_v38  ;;  %v624_v16 = vadd.f32 %v2194_v11, %v3202_v0  ;;  %v618_v18 = vpop.f32.mrb[21].mxu0 }
 0x2fb   :  { %2790 = verf.f32 %v695_v31  ;;  %v619_v39 = vadd.f32 %v3202_v0, %v618_v18 }
 0x2fc   :  { %v698_v40 = vmul.f32 0.70710677, %v624_v16 }
 0x2fd   :  { %v697_v24 = vmul.f32 0.70710677, %v619_v39  ;;  %v2197_v25 = vpop.f32.mrb[22].mxu0 }
 0x2fe   :  { %2792 = verf.f32 %v698_v40  ;;  %v3389_v59 = vadd.f32 %v2197_v25, %v3202_v0  ;;  %v628_v29 = vpop.f32.mrb[23].mxu0 }
 0x2ff   :  { %2794 = verf.f32 %v697_v24  ;;  %v629_v41 = vadd.f32 %v3202_v0, %v628_v29  ;;  %v679_v24 = vmul.f32 0.5, %v609_v37 }
 0x300   :  { %v2785_v42 = vpop.eup %2784  ;;  %v700_v52 = vmul.f32 0.70710677, %v3389_v59 }
 0x301   :  { %v2787_v53 = vpop.eup %2786  ;;  %v726_v34 = vadd.f32 1.0, %v2785_v42  ;;  %v699_v50 = vmul.f32 0.70710677, %v629_v41  ;;  %v2200_v43 = vpop.f32.mrb[24].mxu0  ;;  %v680_v42 = vmul.f32 0.5, %v614_v14  ;;  %v681_v14 = vmul.f32 0.5, %v619_v39 }
 0x302   :  { %v725_v61 = vadd.f32 1.0, %v2787_v53  ;;  %2796 = verf.f32 %v700_v52  ;;  %v3394_v46 = vadd.f32 %v2200_v43, %v3202_v0  ;;  %v638_v47 = vpop.f32.mrb[25].mxu0 }
 0x303   :  { %2798 = verf.f32 %v699_v50  ;;  %v3397_v13 = vadd.f32 %v3202_v0, %v638_v47  ;;  %v742_v11 = vmul.f32 %v726_v34, %v678_v49 }
 0x304   :  { %v2789_v48 = vpop.eup %2788  ;;  %v702_v1 = vmul.f32 0.70710677, %v3394_v46  ;;  %v741_v38 = vmul.f32 %v725_v61, %v677_v44 }
 0x305   :  { %v2791_v31 = vpop.eup %2790  ;;  %v728_v18 = vadd.f32 1.0, %v2789_v48  ;;  %v701_v36 = vmul.f32 0.70710677, %v3397_v13  ;;  %v2203_v40 = vpop.f32.mrb[26].mxu0 }
 0x306   :  { %v727_v25 = vadd.f32 1.0, %v2791_v31  ;;  %2800 = verf.f32 %v702_v1  ;;  %v3402_v29 = vadd.f32 %v2203_v40, %v3202_v0  ;;  %v648_v22 = vpop.f32.mrb[27].mxu0  ;;  %2242 = vmatprep.mubr.f32.mxu1 %v741_v38  ;;  %v682_v38 = vmul.f32 0.5, %v624_v16 }
 0x307   :  { %2802 = verf.f32 %v701_v36  ;;  %v3405_v52 = vadd.f32 %v3202_v0, %v648_v22  ;;  %2243 = vmatmul.mubr.f32.vlgmr.msra.gmra.mrb[16].mxu1 %v742_v11  ;;  %v744_v47 = vmul.f32 %v728_v18, %v680_v42  ;;  %v683_v42 = vmul.f32 0.5, %v629_v41 }
 0x308   :  { %v2793_v53 = vpop.eup %2792  ;;  %v704_v34 = vmul.f32 0.70710677, %v3402_v29  ;;  %v743_v50 = vmul.f32 %v727_v25, %v679_v24  ;;  %2653 = vmatpush3.bf16.msra.mxu1 %v3086_v19 }
 0x309   :  { %v2795_v37 = vpop.eup %2794  ;;  %v730_v43 = vadd.f32 1.0, %v2793_v53  ;;  %v703_v44 = vmul.f32 0.70710677, %v3405_v52  ;;  %v2206_v61 = vpop.f32.mrb[28].mxu0  ;;  %2655 = vmatprep.subr.bf16.mxu1 %v3088_v20 }
 0x30a   :  { %v729_v49 = vadd.f32 1.0, %v2795_v37  ;;  %2804 = verf.f32 %v704_v34  ;;  %v3412_v48 = vadd.f32 %v2206_v61, %v3202_v0  ;;  %v658_v1 = vpop.f32.mrb[29].mxu0  ;;  %2245 = vmatprep.mubr.f32.mxu1 %v743_v50  ;;  %v684_v50 = vmul.f32 0.5, %v3389_v59 }
 0x30b   :  { %2806 = verf.f32 %v703_v44  ;;  %v659_v31 = vadd.f32 %v3202_v0, %v658_v1  ;;  %2246 = vmatmul.mubr.f32.gmra.mrb[18].mxu1 %v744_v47  ;;  %v746_v22 = vmul.f32 %v730_v43, %v682_v38  ;;  %v685_v1 = vmul.f32 0.5, %v3397_v13 }
 0x30c   :  { %v2797_v11 = vpop.eup %2796  ;;  %v706_v36 = vmul.f32 0.70710677, %v3412_v48  ;;  %v745_v40 = vmul.f32 %v729_v49, %v681_v14  ;;  %2657 = vmatpush3.bf16.msra.mxu1 %v3088_v20  ;;  %v686_v59 = vmul.f32 0.5, %v3394_v46  ;;  %v688_v13 = vmul.f32 0.5, %v3402_v29 }
 0x30d   :  { %v2799_v18 = vpop.eup %2798  ;;  %v732_v39 = vadd.f32 1.0, %v2797_v11  ;;  %v705_v24 = vmul.f32 0.70710677, %v659_v31  ;;  %v2209_v25 = vpop.f32.mrb[30].mxu0  ;;  %2659 = vmatprep.subr.bf16.mxu1 %v3097_v26 }
 0x30e   :  { %v731_v53 = vadd.f32 1.0, %v2799_v18  ;;  %2808 = verf.f32 %v706_v36  ;;  %v674_v16 = vadd.f32 %v2209_v25, %v3202_v0  ;;  %v668_v34 = vpop.f32.mrb[31].mxu0  ;;  %2248 = vmatprep.mubr.f32.mxu1 %v745_v40 }
 0x30f   :  { %2810 = verf.f32 %v705_v24  ;;  %v669_v37 = vadd.f32 %v3202_v0, %v668_v34  ;;  %2249 = vmatmul.mubr.f32.gmra.mrb[20].mxu1 %v746_v22  ;;  %v748_v49 = vmul.f32 %v732_v39, %v684_v50  ;;  %v687_v39 = vmul.f32 0.5, %v3405_v52 }
 0x310   :  { %v2801_v44 = vpop.eup %2800  ;;  %v708_v61 = vmul.f32 0.70710677, %v674_v16  ;;  %v747_v47 = vmul.f32 %v731_v53, %v683_v42  ;;  %2661 = vmatpush3.bf16.msra.mxu1 %v3097_v26  ;;  %v689_v34 = vmul.f32 0.5, %v659_v31 }
 0x311   :  { %v2803_v43 = vpop.eup %2802  ;;  %v734_v14 = vadd.f32 1.0, %v2801_v44  ;;  %v707_v41 = vmul.f32 0.70710677, %v669_v37  ;;  %2663 = vmatprep.subr.bf16.mxu1 %v3178_v51  ;;  %v690_v44 = vmul.f32 0.5, %v3412_v48 }
 0x312   :  { %v733_v38 = vadd.f32 1.0, %v2803_v43  ;;  %2812 = verf.f32 %v708_v61  ;;  %2251 = vmatprep.mubr.f32.mxu1 %v747_v47 }
 0x313   :  { %2814 = verf.f32 %v707_v41  ;;  %2252 = vmatmul.mubr.f32.gmra.mrb[22].mxu1 %v748_v49  ;;  %v750_v18 = vmul.f32 %v734_v14, %v686_v59  ;;  %v691_v14 = vmul.f32 0.5, %v669_v37  ;;  %v692_v49 = vmul.f32 0.5, %v674_v16 }
 0x314   :  { %v2805_v0 = vpop.eup %2804  ;;  %v749_v11 = vmul.f32 %v733_v38, %v685_v1  ;;  %2665 = vmatpush3.bf16.msra.mxu1 %v3178_v51  ;;  %v3441_v37 = vstv %s904_s18 }
 0x315   :  { %v2807_v36 = vpop.eup %2806  ;;  %v736_v40 = vadd.f32 1.0, %v2805_v0  ;;  %2667 = vmatprep.subr.bf16.mxu1 %v3182_v54 }
 0x316   :  { %v735_v24 = vadd.f32 1.0, %v2807_v36  ;;  %2254 = vmatprep.mubr.f32.mxu1 %v749_v11 }
 0x317   :  { %2255 = vmatmul.mubr.f32.gmra.mrb[24].mxu1 %v750_v18  ;;  %v752_v53 = vmul.f32 %v736_v40, %v688_v13 }
 0x318   :  { %v2809_v25 = vpop.eup %2808  ;;  %v751_v46 = vmul.f32 %v735_v24, %v687_v39  ;;  %2669 = vmatpush3.bf16.msra.mxu1 %v3182_v54 }
 0x319   :  { %v2811_v22 = vpop.eup %2810  ;;  %v738_v42 = vadd.f32 1.0, %v2809_v25  ;;  %2671 = vmatprep.subr.bf16.mxu1 %v3186_v57 }
 0x31a   :  { %v737_v50 = vadd.f32 1.0, %v2811_v22  ;;  %2257 = vmatprep.mubr.f32.mxu1 %v751_v46 }
 0x31b   :  { %2258 = vmatmul.mubr.f32.gmra.mrb[26].mxu1 %v752_v53  ;;  %v754_v43 = vmul.f32 %v738_v42, %v690_v44 }
 0x31c   :  { %v2813_v52 = vpop.eup %2812  ;;  %v753_v61 = vmul.f32 %v737_v50, %v689_v34  ;;  %2673 = vmatpush3.bf16.msra.mxu1 %v3186_v57 }
 0x31d   :  { %v2815_v29 = vpop.eup %2814  ;;  %v740_v47 = vadd.f32 1.0, %v2813_v52  ;;  %2675 = vmatprep.subr.bf16.mxu1 %v3190_v60 }
 0x31e   :  { %v739_v41 = vadd.f32 1.0, %v2815_v29  ;;  %2260 = vmatprep.mubr.f32.mxu1 %v753_v61 }
 0x31f   :  { %2261 = vmatmul.mubr.f32.gmra.mrb[28].mxu1 %v754_v43  ;;  %v756_v1 = vmul.f32 %v740_v47, %v692_v49 }
 0x320   :  { %v755_v31 = vmul.f32 %v739_v41, %v691_v14  ;;  %2677 = vmatpush3.bf16.msra.mxu1 %v3190_v60 }
 0x321   :  { %2679 = vmatprep.subr.bf16.mxu1 %v3194_v63 }
 0x322   :  { %2263 = vmatprep.mubr.f32.mxu1 %v755_v31 }
 0x323   :  { %2264 = vmatmul.mubr.f32.gmra.mrb[30].mxu1 %v756_v1 }
 0x324   :  { %2681 = vmatpush3.bf16.msra.mxu1 %v3194_v63 }
 0x325   :  { %2715 = vmatprep.subr.bf16.mxu1 %v3086_v19 }
 0x3da   :  { %v2244_v48 = vpop.f32.mrb[16].mxu1 }
 0x3db   :  { %v829_v16 = vadd.f32 %v2244_v48, %v3263_v4  ;;  %v823_v38 = vpop.f32.mrb[17].mxu1 }
 0x3dc   :  { %v824_v59 = vadd.f32 %v3263_v4, %v823_v38 }
 0x3dd   :  { %v907_v0 = vmul.f32 %v3441_v37, %v829_v16 }
 0x3de   :  { %v906_v11 = vmul.f32 %v3441_v37, %v824_v59  ;;  %v2247_v36 = vpop.f32.mrb[18].mxu1 }
 0x3df   :  { %v839_v40 = vadd.f32 %v2247_v36, %v3263_v4  ;;  %v833_v18 = vpop.f32.mrb[19].mxu1  ;;  %v3453_v13 = vadd.f32 %v907_v0, %v3280_v28 }
 0x3e0   :  { %v834_v39 = vadd.f32 %v3263_v4, %v833_v18  ;;  %v3450_v24 = vadd.f32 %v906_v11, %v3277_v7 }
 0x3e1   :  { %v909_v25 = vmul.f32 %v3441_v37, %v839_v40 }
 0x3e2   :  { %v908_v46 = vmul.f32 %v3441_v37, %v834_v39  ;;  %v2250_v22 = vpop.f32.mrb[20].mxu1  ;;  %2298 = vmatprep.mubr.f32.mxu0 %v3450_v24 }
 0x3e3   :  { %v849_v42 = vadd.f32 %v2250_v22, %v3263_v4  ;;  %v843_v53 = vpop.f32.mrb[21].mxu1  ;;  %2299 = vmatmul.mubr.f32.vlgmr.msra.gmra.mrb[32].mxu0 %v3453_v13  ;;  %v3467_v50 = vadd.f32 %v909_v25, %v3294_v15 }
 0x3e4   :  { %v844_v34 = vadd.f32 %v3263_v4, %v843_v53  ;;  %v3462_v7 = vadd.f32 %v908_v46, %v3289_v9  ;;  %2685 = vmatpush3.bf16.msra.mxu0 %v3069_v3 }
 0x3e5   :  { %v911_v28 = vmul.f32 %v3441_v37, %v849_v42  ;;  %2687 = vmatprep.subr.bf16.mxu0 %v3071_v5 }
 0x3e6   :  { %v910_v44 = vmul.f32 %v3441_v37, %v844_v34  ;;  %v2253_v52 = vpop.f32.mrb[22].mxu1  ;;  %2301 = vmatprep.mubr.f32.mxu0 %v3462_v7 }
 0x3e7   :  { %v859_v61 = vadd.f32 %v2253_v52, %v3263_v4  ;;  %v853_v29 = vpop.f32.mrb[23].mxu1  ;;  %2302 = vmatmul.mubr.f32.gmra.mrb[34].mxu0 %v3467_v50  ;;  %v3481_v47 = vadd.f32 %v911_v28, %v3308_v62 }
 0x3e8   :  { %v854_v9 = vadd.f32 %v3263_v4, %v853_v29  ;;  %v3476_v3 = vadd.f32 %v910_v44, %v3303_v55  ;;  %2689 = vmatpush3.bf16.msra.mxu0 %v3071_v5 }
 0x3e9   :  { %v913_v15 = vmul.f32 %v3441_v37, %v859_v61  ;;  %2691 = vmatprep.subr.bf16.mxu0 %v3076_v8 }
 0x3ea   :  { %v912_v43 = vmul.f32 %v3441_v37, %v854_v9  ;;  %v2256_v14 = vpop.f32.mrb[24].mxu1  ;;  %2304 = vmatprep.mubr.f32.mxu0 %v3476_v3 }
 0x3eb   :  { %v869_v41 = vadd.f32 %v2256_v14, %v3263_v4  ;;  %v863_v49 = vpop.f32.mrb[25].mxu1  ;;  %2305 = vmatmul.mubr.f32.gmra.mrb[36].mxu0 %v3481_v47  ;;  %v3495_v31 = vadd.f32 %v913_v15, %v3322_v10 }
 0x3ec   :  { %v864_v55 = vadd.f32 %v3263_v4, %v863_v49  ;;  %v3490_v5 = vadd.f32 %v912_v43, %v3317_v56  ;;  %2693 = vmatpush3.bf16.msra.mxu0 %v3076_v8 }
 0x3ed   :  { %v915_v62 = vmul.f32 %v3441_v37, %v869_v41  ;;  %2695 = vmatprep.subr.bf16.mxu0 %v3083_v12 }
 0x3ee   :  { %v914_v1 = vmul.f32 %v3441_v37, %v864_v55  ;;  %v2259_v48 = vpop.f32.mrb[26].mxu1  ;;  %2307 = vmatprep.mubr.f32.mxu0 %v3490_v5 }
 0x3ef   :  { %v879_v16 = vadd.f32 %v2259_v48, %v3263_v4  ;;  %v873_v38 = vpop.f32.mrb[27].mxu1  ;;  %2308 = vmatmul.mubr.f32.gmra.mrb[38].mxu0 %v3495_v31  ;;  %v3509_v59 = vadd.f32 %v915_v62, %v3336_v17 }
 0x3f0   :  { %v874_v56 = vadd.f32 %v3263_v4, %v873_v38  ;;  %v3504_v8 = vadd.f32 %v914_v1, %v3331_v23  ;;  %2697 = vmatpush3.bf16.msra.mxu0 %v3083_v12 }
 0x3f1   :  { %v917_v10 = vmul.f32 %v3441_v37, %v879_v16  ;;  %2699 = vmatprep.subr.bf16.mxu0 %v3091_v21 }
 0x3f2   :  { %v916_v0 = vmul.f32 %v3441_v37, %v874_v56  ;;  %v2262_v11 = vpop.f32.mrb[28].mxu1  ;;  %2310 = vmatprep.mubr.f32.mxu0 %v3504_v8 }
 0x3f3   :  { %v889_v36 = vadd.f32 %v2262_v11, %v3263_v4  ;;  %v883_v40 = vpop.f32.mrb[29].mxu1  ;;  %2311 = vmatmul.mubr.f32.gmra.mrb[40].mxu0 %v3509_v59  ;;  %v3523_v18 = vadd.f32 %v917_v10, %v3350_v32 }
 0x3f4   :  { %v884_v23 = vadd.f32 %v3263_v4, %v883_v40  ;;  %v3518_v12 = vadd.f32 %v916_v0, %v3345_v2  ;;  %2701 = vmatpush3.bf16.msra.mxu0 %v3091_v21 }
 0x3f5   :  { %v919_v17 = vmul.f32 %v3441_v37, %v889_v36  ;;  %2703 = vmatprep.subr.bf16.mxu0 %v3100_v27 }
 0x3f6   :  { %v918_v39 = vmul.f32 %v3441_v37, %v884_v23  ;;  %v2265_v25 = vpop.f32.mrb[30].mxu1  ;;  %2313 = vmatprep.mubr.f32.mxu0 %v3518_v12 }
 0x3f7   :  { %v899_v46 = vadd.f32 %v2265_v25, %v3263_v4  ;;  %v893_v22 = vpop.f32.mrb[31].mxu1  ;;  %2314 = vmatmul.mubr.f32.gmra.mrb[42].mxu0 %v3523_v18  ;;  %v3537_v42 = vadd.f32 %v919_v17, %v3364_v6  ;;  %v3557_v6 = vld [vmem:[%s3818_s2] ss:$0 sm:$0xff] }
 0x3f8   :  { %v894_v2 = vadd.f32 %v3263_v4, %v893_v22  ;;  %v3532_v21 = vadd.f32 %v918_v39, %v3359_v58  ;;  %2705 = vmatpush3.bf16.msra.mxu0 %v3100_v27 }
 0x3f9   :  { %v921_v32 = vmul.f32 %v3441_v37, %v899_v46  ;;  %2707 = vmatprep.subr.bf16.mxu0 %v3106_v30 }
 0x3fa   :  { %v920_v53 = vmul.f32 %v3441_v37, %v894_v2  ;;  %2316 = vmatprep.mubr.f32.mxu0 %v3532_v21 }
 0x3fb   :  { %2317 = vmatmul.mubr.f32.gmra.mrb[44].mxu0 %v3537_v42  ;;  %v3548_v27 = vadd.f32 %v921_v32, %v3375_v45 }
 0x3fc   :  { %v3544_v4 = vadd.f32 %v920_v53, %v3371_v35  ;;  %2709 = vmatpush3.bf16.msra.mxu0 %v3106_v30 }
 0x3fd   :  { %2711 = vmatprep.subr.bf16.mxu0 %v3111_v33 }
 0x3fe   :  { %2319 = vmatprep.mubr.f32.mxu0 %v3544_v4 }
 0x3ff   :  { %2320 = vmatmul.mubr.f32.gmra.mrb[46].mxu0 %v3548_v27 }
 0x400   :  { %2713 = vmatpush3.bf16.msra.mxu0 %v3111_v33 }
 0x4b6   :  { %v2300_v58 = vpop.f32.mrb[32].mxu0 }
 0x4b7   :  { %v1010_v35 = vadd.f32 %v3557_v6, %v2300_v58  ;;  %v1004_v30 = vpop.f32.mrb[33].mxu0 }
 0x4b8   :  { %v1005_v45 = vadd.f32 %v3557_v6, %v1004_v30 }
 0x4b9   :  { %v1100_v37 = vmul.f32 0.70710677, %v1010_v35  ;;  %v1084_v39 = vmul.f32 0.5, %v1010_v35 }
 0x4ba   :  { %v1099_v34 = vmul.f32 0.70710677, %v1005_v45  ;;  %v2303_v28 = vpop.f32.mrb[34].mxu0  ;;  %v1083_v36 = vmul.f32 0.5, %v1005_v45 }
 0x4bb   :  { %2816 = verf.f32 %v1100_v37  ;;  %v1020_v44 = vadd.f32 %v3557_v6, %v2303_v28  ;;  %v1014_v52 = vpop.f32.mrb[35].mxu0 }
 0x4bc   :  { %2818 = verf.f32 %v1099_v34  ;;  %v1015_v33 = vadd.f32 %v3557_v6, %v1014_v52 }
 0x4bd   :  { %v1102_v61 = vmul.f32 0.70710677, %v1020_v44  ;;  %v1086_v52 = vmul.f32 0.5, %v1020_v44 }
 0x4be   :  { %v1101_v29 = vmul.f32 0.70710677, %v1015_v33  ;;  %v2306_v9 = vpop.f32.mrb[36].mxu0  ;;  %v1085_v37 = vmul.f32 0.5, %v1015_v33 }
 0x4bf   :  { %2820 = verf.f32 %v1102_v61  ;;  %v1030_v15 = vadd.f32 %v3557_v6, %v2306_v9  ;;  %v1024_v43 = vpop.f32.mrb[37].mxu0 }
 0x4c0   :  { %2822 = verf.f32 %v1101_v29  ;;  %v1025_v14 = vadd.f32 %v3557_v6, %v1024_v43 }
 0x4c1   :  { %v1104_v41 = vmul.f32 0.70710677, %v1030_v15 }
 0x4c2   :  { %v1103_v49 = vmul.f32 0.70710677, %v1025_v14  ;;  %v2309_v55 = vpop.f32.mrb[38].mxu0  ;;  %v1087_v44 = vmul.f32 0.5, %v1025_v14 }
 0x4c3   :  { %2824 = verf.f32 %v1104_v41  ;;  %v3566_v62 = vadd.f32 %v3557_v6, %v2309_v55  ;;  %v1034_v1 = vpop.f32.mrb[39].mxu0 }
 0x4c4   :  { %2826 = verf.f32 %v1103_v49  ;;  %v1035_v48 = vadd.f32 %v3557_v6, %v1034_v1 }
 0x4c5   :  { %v2817_v16 = vpop.eup %2816  ;;  %v1106_v38 = vmul.f32 0.70710677, %v3566_v62 }
 0x4c6   :  { %v2819_v56 = vpop.eup %2818  ;;  %v1132_v10 = vadd.f32 1.0, %v2817_v16  ;;  %v1105_v0 = vmul.f32 0.70710677, %v1035_v48  ;;  %v2312_v11 = vpop.f32.mrb[40].mxu0 }
 0x4c7   :  { %v1131_v40 = vadd.f32 1.0, %v2819_v56  ;;  %2828 = verf.f32 %v1106_v38  ;;  %v3571_v23 = vadd.f32 %v3557_v6, %v2312_v11  ;;  %v1044_v17 = vpop.f32.mrb[41].mxu0 }
 0x4c8   :  { %2830 = verf.f32 %v1105_v0  ;;  %v3574_v25 = vadd.f32 %v3557_v6, %v1044_v17  ;;  %v1148_v53 = vmul.f32 %v1132_v10, %v1084_v39  ;;  %v1088_v10 = vmul.f32 0.5, %v1030_v15 }
 0x4c9   :  { %v2821_v46 = vpop.eup %2820  ;;  %v1108_v22 = vmul.f32 0.70710677, %v3571_v23  ;;  %v1147_v2 = vmul.f32 %v1131_v40, %v1083_v36 }
 0x4ca   :  { %v2823_v32 = vpop.eup %2822  ;;  %v1134_v58 = vadd.f32 1.0, %v2821_v46  ;;  %v1107_v30 = vmul.f32 0.70710677, %v3574_v25  ;;  %v2315_v45 = vpop.f32.mrb[42].mxu0 }
 0x4cb   :  { %v1133_v34 = vadd.f32 1.0, %v2823_v32  ;;  %2832 = verf.f32 %v1108_v22  ;;  %v3579_v28 = vadd.f32 %v3557_v6, %v2315_v45  ;;  %v1054_v35 = vpop.f32.mrb[43].mxu0  ;;  %2354 = vmatprep.mubr.f32.mxu1 %v1147_v2  ;;  %v1089_v22 = vmul.f32 0.5, %v1035_v48 }
 0x4cc   :  { %2834 = verf.f32 %v1107_v30  ;;  %v3582_v61 = vadd.f32 %v3557_v6, %v1054_v35  ;;  %2355 = vmatmul.mubr.f32.vlgmr.msra.gmra.mrb[32].mxu1 %v1148_v53  ;;  %v1150_v1 = vmul.f32 %v1134_v58, %v1086_v52  ;;  %v1090_v53 = vmul.f32 0.5, %v3566_v62 }
 0x4cd   :  { %v2825_v29 = vpop.eup %2824  ;;  %v1110_v9 = vmul.f32 0.70710677, %v3579_v28  ;;  %v1149_v43 = vmul.f32 %v1133_v34, %v1085_v37  ;;  %2717 = vmatpush3.bf16.msra.mxu1 %v3086_v19  ;;  %v1091_v52 = vmul.f32 0.5, %v3574_v25  ;;  %v1092_v62 = vmul.f32 0.5, %v3571_v23 }
 0x4ce   :  { %v2827_v33 = vpop.eup %2826  ;;  %v1136_v41 = vadd.f32 1.0, %v2825_v29  ;;  %v1109_v49 = vmul.f32 0.70710677, %v3582_v61  ;;  %v2318_v55 = vpop.f32.mrb[44].mxu0  ;;  %2719 = vmatprep.subr.bf16.mxu1 %v3088_v20  ;;  %v1094_v25 = vmul.f32 0.5, %v3579_v28 }
 0x4cf   :  { %v1135_v16 = vadd.f32 1.0, %v2827_v33  ;;  %2836 = verf.f32 %v1110_v9  ;;  %v3589_v38 = vadd.f32 %v3557_v6, %v2318_v55  ;;  %v1064_v56 = vpop.f32.mrb[45].mxu0  ;;  %2357 = vmatprep.mubr.f32.mxu1 %v1149_v43 }
 0x4d0   :  { %2838 = verf.f32 %v1109_v49  ;;  %v1065_v19 = vadd.f32 %v3557_v6, %v1064_v56  ;;  %2358 = vmatmul.mubr.f32.gmra.mrb[34].mxu1 %v1150_v1  ;;  %v1152_v46 = vmul.f32 %v1136_v41, %v1088_v10  ;;  %v1093_v49 = vmul.f32 0.5, %v3582_v61 }
 0x4d1   :  { %v2829_v0 = vpop.eup %2828  ;;  %v1112_v11 = vmul.f32 0.70710677, %v3589_v38  ;;  %v1151_v36 = vmul.f32 %v1135_v16, %v1087_v44  ;;  %2721 = vmatpush3.bf16.msra.mxu1 %v3088_v20 }
 0x4d2   :  { %v2831_v40 = vpop.eup %2830  ;;  %v1138_v14 = vadd.f32 1.0, %v2829_v0  ;;  %v1111_v17 = vmul.f32 0.70710677, %v1065_v19  ;;  %v2321_v39 = vpop.f32.mrb[46].mxu0  ;;  %2723 = vmatprep.subr.bf16.mxu1 %v3097_v26  ;;  %v1096_v0 = vmul.f32 0.5, %v3589_v38  ;;  %v3617_v38 = vstv %s1310_s21 }
 0x4d3   :  { %v1137_v2 = vadd.f32 1.0, %v2831_v40  ;;  %2840 = verf.f32 %v1112_v11  ;;  %v1080_v15 = vadd.f32 %v3557_v6, %v2321_v39  ;;  %v1074_v32 = vpop.f32.mrb[47].mxu0  ;;  %2360 = vmatprep.mubr.f32.mxu1 %v1151_v36 }
 0x4d4   :  { %2842 = verf.f32 %v1111_v17  ;;  %v1075_v58 = vadd.f32 %v3557_v6, %v1074_v32  ;;  %2361 = vmatmul.mubr.f32.gmra.mrb[36].mxu1 %v1152_v46  ;;  %v1154_v35 = vmul.f32 %v1138_v14, %v1090_v53  ;;  %v3622_v46 = vld [vmem:[%s3820_s4] ss:$0 sm:$0xff] }
 0x4d5   :  { %v2833_v20 = vpop.eup %2832  ;;  %v1114_v30 = vmul.f32 0.70710677, %v1080_v15  ;;  %v1153_v45 = vmul.f32 %v1137_v2, %v1089_v22  ;;  %2725 = vmatpush3.bf16.msra.mxu1 %v3097_v26  ;;  %v1098_v17 = vmul.f32 0.5, %v1080_v15 }
 0x4d6   :  { %v2835_v37 = vpop.eup %2834  ;;  %v1140_v34 = vadd.f32 1.0, %v2833_v20  ;;  %v1113_v48 = vmul.f32 0.70710677, %v1075_v58  ;;  %2727 = vmatprep.subr.bf16.mxu1 %v3178_v51 }
 0x4d7   :  { %v1139_v29 = vadd.f32 1.0, %v2835_v37  ;;  %2844 = verf.f32 %v1114_v30  ;;  %2363 = vmatprep.mubr.f32.mxu1 %v1153_v45 }
 0x4d8   :  { %2846 = verf.f32 %v1113_v48  ;;  %2364 = vmatmul.mubr.f32.gmra.mrb[38].mxu1 %v1154_v35  ;;  %v1156_v41 = vmul.f32 %v1140_v34, %v1092_v62 }
 0x4d9   :  { %v2837_v9 = vpop.eup %2836  ;;  %v1155_v43 = vmul.f32 %v1139_v29, %v1091_v52  ;;  %2729 = vmatpush3.bf16.msra.mxu1 %v3178_v51  ;;  %v1095_v51 = vmul.f32 0.5, %v1065_v19 }
 0x4da   :  { %v2839_v26 = vpop.eup %2838  ;;  %v1142_v33 = vadd.f32 1.0, %v2837_v9  ;;  %2731 = vmatprep.subr.bf16.mxu1 %v3182_v54 }
 0x4db   :  { %v1141_v55 = vadd.f32 1.0, %v2839_v26  ;;  %2366 = vmatprep.mubr.f32.mxu1 %v1155_v43 }
 0x4dc   :  { %2367 = vmatmul.mubr.f32.gmra.mrb[40].mxu1 %v1156_v41  ;;  %v1158_v56 = vmul.f32 %v1142_v33, %v1094_v25 }
 0x4dd   :  { %v2841_v1 = vpop.eup %2840  ;;  %v1157_v23 = vmul.f32 %v1141_v55, %v1093_v49  ;;  %2733 = vmatpush3.bf16.msra.mxu1 %v3182_v54  ;;  %v1097_v54 = vmul.f32 0.5, %v1075_v58 }
 0x4de   :  { %v2843_v44 = vpop.eup %2842  ;;  %v1144_v16 = vadd.f32 1.0, %v2841_v1  ;;  %2735 = vmatprep.subr.bf16.mxu1 %v3186_v57 }
 0x4df   :  { %v1143_v10 = vadd.f32 1.0, %v2843_v44  ;;  %2369 = vmatprep.mubr.f32.mxu1 %v1157_v23 }
 0x4e0   :  { %2370 = vmatmul.mubr.f32.gmra.mrb[42].mxu1 %v1158_v56  ;;  %v1160_v40 = vmul.f32 %v1144_v16, %v1096_v0 }
 0x4e1   :  { %v2845_v61 = vpop.eup %2844  ;;  %v1159_v11 = vmul.f32 %v1143_v10, %v1095_v51  ;;  %2737 = vmatpush3.bf16.msra.mxu1 %v3186_v57 }
 0x4e2   :  { %v2847_v28 = vpop.eup %2846  ;;  %v1146_v36 = vadd.f32 1.0, %v2845_v61  ;;  %2739 = vmatprep.subr.bf16.mxu1 %v3190_v60 }
 0x4e3   :  { %v1145_v14 = vadd.f32 1.0, %v2847_v28  ;;  %2372 = vmatprep.mubr.f32.mxu1 %v1159_v11 }
 0x4e4   :  { %2373 = vmatmul.mubr.f32.gmra.mrb[44].mxu1 %v1160_v40  ;;  %v1162_v39 = vmul.f32 %v1146_v36, %v1098_v17 }
 0x4e5   :  { %v1161_v19 = vmul.f32 %v1145_v14, %v1097_v54  ;;  %2741 = vmatpush3.bf16.msra.mxu1 %v3190_v60 }
 0x4e6   :  { %2743 = vmatprep.subr.bf16.mxu1 %v3194_v63 }
 0x4e7   :  { %2375 = vmatprep.mubr.f32.mxu1 %v1161_v19 }
 0x4e8   :  { %2376 = vmatmul.mubr.f32.gmra.mrb[46].mxu1 %v1162_v39 }
 0x4e9   :  { %2745 = vmatpush3.bf16.msra.mxu1 %v3194_v63 }
 0x59f   :  { %v2356_v57 = vpop.f32.mrb[32].mxu1 }
 0x5a0   :  { %v1235_v60 = vadd.f32 %v3622_v46, %v2356_v57  ;;  %v1229_v22 = vpop.f32.mrb[33].mxu1 }
 0x5a1   :  { %v1230_v2 = vadd.f32 %v3622_v46, %v1229_v22 }
 0x5a2   :  { %v1313_v15 = vmul.f32 %v3617_v38, %v1235_v60 }
 0x5a3   :  { %v1312_v63 = vmul.f32 %v3617_v38, %v1230_v2  ;;  %v2359_v32 = vpop.f32.mrb[34].mxu1 }
 0x5a4   :  { %v1245_v53 = vadd.f32 %v3622_v46, %v2359_v32  ;;  %v1239_v58 = vpop.f32.mrb[35].mxu1  ;;  %v3634_v45 = vadd.f32 %v1313_v15, %v3453_v13 }
 0x5a5   :  { %v1240_v20 = vadd.f32 %v3622_v46, %v1239_v58  ;;  %v3631_v30 = vadd.f32 %v1312_v63, %v3450_v24 }
 0x5a6   :  { %v1315_v37 = vmul.f32 %v3617_v38, %v1245_v53 }
 0x5a7   :  { %v1314_v34 = vmul.f32 %v3617_v38, %v1240_v20  ;;  %v2362_v48 = vpop.f32.mrb[36].mxu1  ;;  %2410 = vmatprep.mubr.f32.mxu0 %v3631_v30 }
 0x5a8   :  { %v1255_v35 = vadd.f32 %v3622_v46, %v2362_v48  ;;  %v1249_v52 = vpop.f32.mrb[37].mxu1  ;;  %2411 = vmatmul.mubr.f32.vlgmr.msra.gmra.mrb[48].mxu0 %v3634_v45  ;;  %v3647_v62 = vadd.f32 %v1315_v37, %v3467_v50 }
 0x5a9   :  { %v1250_v29 = vadd.f32 %v3622_v46, %v1249_v52  ;;  %v3643_v24 = vadd.f32 %v1314_v34, %v3462_v7 }
 0x5aa   :  { %v1317_v13 = vmul.f32 %v3617_v38, %v1255_v35 }
 0x5ab   :  { %v1316_v9 = vmul.f32 %v3617_v38, %v1250_v29  ;;  %v2365_v43 = vpop.f32.mrb[38].mxu1  ;;  %2413 = vmatprep.mubr.f32.mxu0 %v3643_v24 }
 0x5ac   :  { %v1265_v26 = vadd.f32 %v3622_v46, %v2365_v43  ;;  %v1259_v33 = vpop.f32.mrb[39].mxu1  ;;  %2414 = vmatmul.mubr.f32.gmra.mrb[50].mxu0 %v3647_v62  ;;  %v3659_v50 = vadd.f32 %v1317_v13, %v3481_v47 }
 0x5ad   :  { %v1260_v41 = vadd.f32 %v3622_v46, %v1259_v33  ;;  %v3655_v7 = vadd.f32 %v1316_v9, %v3476_v3 }
 0x5ae   :  { %v1319_v49 = vmul.f32 %v3617_v38, %v1265_v26 }
 0x5af   :  { %v1318_v55 = vmul.f32 %v3617_v38, %v1260_v41  ;;  %v2368_v25 = vpop.f32.mrb[40].mxu1  ;;  %2416 = vmatprep.mubr.f32.mxu0 %v3655_v7 }
 0x5b0   :  { %v1275_v1 = vadd.f32 %v3622_v46, %v2368_v25  ;;  %v1269_v23 = vpop.f32.mrb[41].mxu1  ;;  %2417 = vmatmul.mubr.f32.gmra.mrb[52].mxu0 %v3659_v50  ;;  %v3671_v47 = vadd.f32 %v1319_v49, %v3495_v31 }
 0x5b1   :  { %v1270_v44 = vadd.f32 %v3622_v46, %v1269_v23  ;;  %v3667_v3 = vadd.f32 %v1318_v55, %v3490_v5 }
 0x5b2   :  { %v1321_v16 = vmul.f32 %v3617_v38, %v1275_v1 }
 0x5b3   :  { %v1320_v56 = vmul.f32 %v3617_v38, %v1270_v44  ;;  %v2371_v51 = vpop.f32.mrb[42].mxu1  ;;  %2419 = vmatprep.mubr.f32.mxu0 %v3667_v3 }
 0x5b4   :  { %v1285_v10 = vadd.f32 %v3622_v46, %v2371_v51  ;;  %v1279_v0 = vpop.f32.mrb[43].mxu1  ;;  %2420 = vmatmul.mubr.f32.gmra.mrb[54].mxu0 %v3671_v47  ;;  %v3683_v31 = vadd.f32 %v1321_v16, %v3509_v59 }
 0x5b5   :  { %v1280_v61 = vadd.f32 %v3622_v46, %v1279_v0  ;;  %v3679_v5 = vadd.f32 %v1320_v56, %v3504_v8 }
 0x5b6   :  { %v1323_v11 = vmul.f32 %v3617_v38, %v1285_v10 }
 0x5b7   :  { %v1322_v28 = vmul.f32 %v3617_v38, %v1280_v61  ;;  %v2374_v36 = vpop.f32.mrb[44].mxu1  ;;  %2422 = vmatprep.mubr.f32.mxu0 %v3679_v5 }
 0x5b8   :  { %v1295_v40 = vadd.f32 %v3622_v46, %v2374_v36  ;;  %v1289_v54 = vpop.f32.mrb[45].mxu1  ;;  %2423 = vmatmul.mubr.f32.gmra.mrb[56].mxu0 %v3683_v31  ;;  %v3695_v59 = vadd.f32 %v1323_v11, %v3523_v18 }
 0x5b9   :  { %v1290_v14 = vadd.f32 %v3622_v46, %v1289_v54  ;;  %v3691_v8 = vadd.f32 %v1322_v28, %v3518_v12 }
 0x5ba   :  { %v1325_v17 = vmul.f32 %v3617_v38, %v1295_v40 }
 0x5bb   :  { %v1324_v19 = vmul.f32 %v3617_v38, %v1290_v14  ;;  %v2377_v39 = vpop.f32.mrb[46].mxu1  ;;  %2425 = vmatprep.mubr.f32.mxu0 %v3691_v8 }
 0x5bc   :  { %v1305_v57 = vadd.f32 %v3622_v46, %v2377_v39  ;;  %v1299_v60 = vpop.f32.mrb[47].mxu1  ;;  %2426 = vmatmul.mubr.f32.gmra.mrb[58].mxu0 %v3695_v59  ;;  %v3707_v18 = vadd.f32 %v1325_v17, %v3537_v42 }
 0x5bd   :  { %v1300_v22 = vadd.f32 %v3622_v46, %v1299_v60  ;;  %v3703_v12 = vadd.f32 %v1324_v19, %v3532_v21 }
 0x5be   :  { %v1327_v2 = vmul.f32 %v3617_v38, %v1305_v57 }
 0x5bf   :  { %v1326_v15 = vmul.f32 %v3617_v38, %v1300_v22  ;;  %2428 = vmatprep.mubr.f32.mxu0 %v3703_v12 }
 0x5c0   :  { %2429 = vmatmul.mubr.f32.gmra.mrb[60].mxu0 %v3707_v18  ;;  %v3716_v32 = vadd.f32 %v1327_v2, %v3548_v27 }
 0x5c1   :  { %v3713_v63 = vadd.f32 %v1326_v15, %v3544_v4 }
 0x5c3   :  { %2431 = vmatprep.mubr.f32.mxu0 %v3713_v63 }
 0x5c4   :  { %2432 = vmatmul.mubr.f32.gmra.mrb[62].mxu0 %v3716_v32 }
 0x67b   :  { %v2412_v21 = vpop.f32.mrb[48].mxu0 }
 0x67c   :  { %v1416_v42 = vadd.f32 %v3557_v6, %v2412_v21  ;;  %v1410_v53 = vpop.f32.mrb[49].mxu0 }
 0x67d   :  { %v1411_v38 = vadd.f32 %v3557_v6, %v1410_v53 }
 0x67e   :  { %v1506_v58 = vmul.f32 0.70710677, %v1416_v42  ;;  %v1490_v11 = vmul.f32 0.5, %v1416_v42 }
 0x67f   :  { %v1505_v20 = vmul.f32 0.70710677, %v1411_v38  ;;  %v2415_v37 = vpop.f32.mrb[50].mxu0  ;;  %v1489_v51 = vmul.f32 0.5, %v1411_v38 }
 0x680   :  { %2848 = verf.f32 %v1506_v58  ;;  %v1426_v4 = vadd.f32 %v3557_v6, %v2415_v37  ;;  %v1420_v34 = vpop.f32.mrb[51].mxu0 }
 0x681   :  { %2850 = verf.f32 %v1505_v20  ;;  %v1421_v27 = vadd.f32 %v3557_v6, %v1420_v34 }
 0x682   :  { %v1508_v48 = vmul.f32 0.70710677, %v1426_v4  ;;  %v1492_v21 = vmul.f32 0.5, %v1426_v4 }
 0x683   :  { %v1507_v35 = vmul.f32 0.70710677, %v1421_v27  ;;  %v2418_v52 = vpop.f32.mrb[52].mxu0  ;;  %v1491_v60 = vmul.f32 0.5, %v1421_v27 }
 0x684   :  { %2852 = verf.f32 %v1508_v48  ;;  %v1436_v29 = vadd.f32 %v3557_v6, %v2418_v52  ;;  %v1430_v13 = vpop.f32.mrb[53].mxu0 }
 0x685   :  { %2854 = verf.f32 %v1507_v35  ;;  %v1431_v9 = vadd.f32 %v3557_v6, %v1430_v13 }
 0x686   :  { %v1510_v43 = vmul.f32 0.70710677, %v1436_v29  ;;  %v1494_v4 = vmul.f32 0.5, %v1436_v29 }
 0x687   :  { %v1509_v26 = vmul.f32 0.70710677, %v1431_v9  ;;  %v2421_v33 = vpop.f32.mrb[54].mxu0  ;;  %v1493_v35 = vmul.f32 0.5, %v1431_v9 }
 0x688   :  { %2856 = verf.f32 %v1510_v43  ;;  %v3727_v41 = vadd.f32 %v3557_v6, %v2421_v33  ;;  %v1440_v49 = vpop.f32.mrb[55].mxu0 }
 0x689   :  { %2858 = verf.f32 %v1509_v26  ;;  %v1441_v55 = vadd.f32 %v3557_v6, %v1440_v49 }
 0x68a   :  { %v2849_v25 = vpop.eup %2848  ;;  %v1512_v1 = vmul.f32 0.70710677, %v3727_v41  ;;  %v1496_v29 = vmul.f32 0.5, %v3727_v41 }
 0x68b   :  { %v2851_v23 = vpop.eup %2850  ;;  %v1538_v44 = vadd.f32 1.0, %v2849_v25  ;;  %v1511_v16 = vmul.f32 0.70710677, %v1441_v55  ;;  %v2424_v56 = vpop.f32.mrb[56].mxu0  ;;  %v1495_v9 = vmul.f32 0.5, %v1441_v55 }
 0x68c   :  { %v1537_v10 = vadd.f32 1.0, %v2851_v23  ;;  %2860 = verf.f32 %v1512_v1  ;;  %v3732_v0 = vadd.f32 %v3557_v6, %v2424_v56  ;;  %v1450_v61 = vpop.f32.mrb[57].mxu0 }
 0x68d   :  { %2862 = verf.f32 %v1511_v16  ;;  %v1451_v28 = vadd.f32 %v3557_v6, %v1450_v61  ;;  %v1554_v17 = vmul.f32 %v1538_v44, %v1490_v11 }
 0x68e   :  { %v2853_v36 = vpop.eup %2852  ;;  %v1514_v40 = vmul.f32 0.70710677, %v3732_v0  ;;  %v1553_v54 = vmul.f32 %v1537_v10, %v1489_v51 }
 0x68f   :  { %v2855_v14 = vpop.eup %2854  ;;  %v1540_v19 = vadd.f32 1.0, %v2853_v36  ;;  %v1513_v39 = vmul.f32 0.70710677, %v1451_v28  ;;  %v2427_v57 = vpop.f32.mrb[58].mxu0  ;;  %v1497_v55 = vmul.f32 0.5, %v1451_v28 }
 0x690   :  { %v1539_v22 = vadd.f32 1.0, %v2855_v14  ;;  %2864 = verf.f32 %v1514_v40  ;;  %v3737_v2 = vadd.f32 %v3557_v6, %v2427_v57  ;;  %v1460_v15 = vpop.f32.mrb[59].mxu0  ;;  %2466 = vmatprep.mubr.f32.mxu1 %v1553_v54 }
 0x691   :  { %2866 = verf.f32 %v1513_v39  ;;  %v1461_v42 = vadd.f32 %v3557_v6, %v1460_v15  ;;  %2467 = vmatmul.mubr.f32.vlgmr.msra.gmra.mrb[48].mxu1 %v1554_v17  ;;  %v1556_v48 = vmul.f32 %v1540_v19, %v1492_v21 }
 0x692   :  { %v2857_v53 = vpop.eup %2856  ;;  %v1516_v38 = vmul.f32 0.70710677, %v3737_v2  ;;  %v1555_v58 = vmul.f32 %v1539_v22, %v1491_v60  ;;  %v1498_v60 = vmul.f32 0.5, %v3732_v0 }
 0x693   :  { %v2859_v20 = vpop.eup %2858  ;;  %v1542_v37 = vadd.f32 1.0, %v2857_v53  ;;  %v1515_v34 = vmul.f32 0.70710677, %v1461_v42  ;;  %v2430_v27 = vpop.f32.mrb[60].mxu0  ;;  %v1499_v53 = vmul.f32 0.5, %v1461_v42 }
 0x694   :  { %v1541_v52 = vadd.f32 1.0, %v2859_v20  ;;  %2868 = verf.f32 %v1516_v38  ;;  %v1476_v13 = vadd.f32 %v3557_v6, %v2430_v27  ;;  %v1470_v43 = vpop.f32.mrb[61].mxu0  ;;  %2469 = vmatprep.mubr.f32.mxu1 %v1555_v58  ;;  %v1500_v58 = vmul.f32 0.5, %v3737_v2 }
 0x695   :  { %2870 = verf.f32 %v1515_v34  ;;  %v1471_v26 = vadd.f32 %v3557_v6, %v1470_v43  ;;  %2470 = vmatmul.mubr.f32.gmra.mrb[50].mxu1 %v1556_v48  ;;  %v1558_v56 = vmul.f32 %v1542_v37, %v1494_v4 }
 0x696   :  { %v2861_v33 = vpop.eup %2860  ;;  %v1518_v49 = vmul.f32 0.70710677, %v1476_v13  ;;  %v1557_v25 = vmul.f32 %v1541_v52, %v1493_v35  ;;  %v1502_v35 = vmul.f32 0.5, %v1476_v13 }
 0x697   :  { %v2863_v1 = vpop.eup %2862  ;;  %v1544_v23 = vadd.f32 1.0, %v2861_v33  ;;  %v1517_v44 = vmul.f32 0.70710677, %v1471_v26  ;;  %v2433_v16 = vpop.f32.mrb[62].mxu0  ;;  %v1501_v48 = vmul.f32 0.5, %v1471_v26  ;;  %v3751_v26 = vstv %s1716_s26 }
 0x698   :  { %v1543_v51 = vadd.f32 1.0, %v2863_v1  ;;  %2872 = verf.f32 %v1518_v49  ;;  %v1486_v10 = vadd.f32 %v3557_v6, %v2433_v16  ;;  %v1480_v61 = vpop.f32.mrb[63].mxu0  ;;  %2472 = vmatprep.mubr.f32.mxu1 %v1557_v25 }
 0x699   :  { %2874 = verf.f32 %v1517_v44  ;;  %v1481_v11 = vadd.f32 %v3557_v6, %v1480_v61  ;;  %2473 = vmatmul.mubr.f32.gmra.mrb[52].mxu1 %v1558_v56  ;;  %v1560_v39 = vmul.f32 %v1544_v23, %v1496_v29 }
 0x69a   :  { %v2865_v36 = vpop.eup %2864  ;;  %v1520_v40 = vmul.f32 0.70710677, %v1486_v10  ;;  %v1559_v54 = vmul.f32 %v1543_v51, %v1495_v9  ;;  %v1504_v2 = vmul.f32 0.5, %v1486_v10 }
 0x69b   :  { %v2867_v14 = vpop.eup %2866  ;;  %v1546_v17 = vadd.f32 1.0, %v2865_v36  ;;  %v1519_v19 = vmul.f32 0.70710677, %v1481_v11  ;;  %v1503_v49 = vmul.f32 0.5, %v1481_v11 }
 0x69c   :  { %v1545_v57 = vadd.f32 1.0, %v2867_v14  ;;  %2876 = verf.f32 %v1520_v40  ;;  %2475 = vmatprep.mubr.f32.mxu1 %v1559_v54 }
 0x69d   :  { %2878 = verf.f32 %v1519_v19  ;;  %2476 = vmatmul.mubr.f32.gmra.mrb[54].mxu1 %v1560_v39  ;;  %v1562_v21 = vmul.f32 %v1546_v17, %v1498_v60 }
 0x69e   :  { %v2869_v41 = vpop.eup %2868  ;;  %v1561_v22 = vmul.f32 %v1545_v57, %v1497_v55 }
 0x69f   :  { %v2871_v15 = vpop.eup %2870  ;;  %v1548_v6 = vadd.f32 1.0, %v2869_v41 }
 0x6a0   :  { %v1547_v38 = vadd.f32 1.0, %v2871_v15  ;;  %2478 = vmatprep.mubr.f32.mxu1 %v1561_v22 }
 0x6a1   :  { %2479 = vmatmul.mubr.f32.gmra.mrb[56].mxu1 %v1562_v21  ;;  %v1564_v27 = vmul.f32 %v1548_v6, %v1500_v58 }
 0x6a2   :  { %v2873_v20 = vpop.eup %2872  ;;  %v1563_v28 = vmul.f32 %v1547_v38, %v1499_v53 }
 0x6a3   :  { %v2875_v37 = vpop.eup %2874  ;;  %v1550_v34 = vadd.f32 1.0, %v2873_v20 }
 0x6a4   :  { %v1549_v0 = vadd.f32 1.0, %v2875_v37  ;;  %2481 = vmatprep.mubr.f32.mxu1 %v1563_v28 }
 0x6a5   :  { %2482 = vmatmul.mubr.f32.gmra.mrb[58].mxu1 %v1564_v27  ;;  %v1566_v42 = vmul.f32 %v1550_v34, %v1502_v35 }
 0x6a6   :  { %v2877_v52 = vpop.eup %2876  ;;  %v1565_v43 = vmul.f32 %v1549_v0, %v1501_v48 }
 0x6a7   :  { %v2879_v4 = vpop.eup %2878  ;;  %v1552_v33 = vadd.f32 1.0, %v2877_v52 }
 0x6a8   :  { %v1551_v25 = vadd.f32 1.0, %v2879_v4  ;;  %2484 = vmatprep.mubr.f32.mxu1 %v1565_v43 }
 0x6a9   :  { %2485 = vmatmul.mubr.f32.gmra.mrb[60].mxu1 %v1566_v42  ;;  %v1568_v23 = vmul.f32 %v1552_v33, %v1504_v2 }
 0x6aa   :  { %v1567_v1 = vmul.f32 %v1551_v25, %v1503_v49 }
 0x6ac   :  { %2487 = vmatprep.mubr.f32.mxu1 %v1567_v1 }
 0x6ad   :  { %2488 = vmatmul.mubr.f32.gmra.mrb[62].mxu1 %v1568_v23 }
 0x764   :  { %v2468_v13 = vpop.f32.mrb[48].mxu1 }
 0x765   :  { %v1641_v44 = vadd.f32 %v3622_v46, %v2468_v13  ;;  %v1635_v16 = vpop.f32.mrb[49].mxu1 }
 0x766   :  { %v1636_v56 = vadd.f32 %v3622_v46, %v1635_v16 }
 0x767   :  { %v1719_v9 = vmul.f32 %v3751_v26, %v1641_v44 }
 0x768   :  { %v1718_v51 = vmul.f32 %v3751_v26, %v1636_v56  ;;  %v2471_v10 = vpop.f32.mrb[50].mxu1 }
 0x769   :  { %v1735_v61 = vadd.f32 %v1719_v9, %v3634_v45  ;;  %v1651_v29 = vadd.f32 %v3622_v46, %v2471_v10  ;;  %v1645_v11 = vpop.f32.mrb[51].mxu1 }
 0x76a   :  { %v1734_v36 = vadd.f32 %v1718_v51, %v3631_v30  ;;  %v1646_v40 = vadd.f32 %v3622_v46, %v1645_v11 }
 0x76b   :  { %1751 = vst [vmem:[#allocation9 + $0x8] sm:$0xff] %v1735_v61  ;;  %v1721_v54 = vmul.f32 %v3751_v26, %v1651_v29 }
 0x76c   :  { %1750 = vst [vmem:[#allocation9] sm:$0xff] %v1734_v36  ;;  %v1720_v14 = vmul.f32 %v3751_v26, %v1646_v40  ;;  %v2474_v17 = vpop.f32.mrb[52].mxu1 }
 0x76d   :  { %v1737_v19 = vadd.f32 %v1721_v54, %v3647_v62  ;;  %v1661_v39 = vadd.f32 %v3622_v46, %v2474_v17  ;;  %v1655_v55 = vpop.f32.mrb[53].mxu1 }
 0x76e   :  { %v1736_v45 = vadd.f32 %v1720_v14, %v3643_v24  ;;  %v1656_v57 = vadd.f32 %v3622_v46, %v1655_v55 }
 0x76f   :  { %1753 = vst [vmem:[#allocation9 + $0x18] sm:$0xff] %v1737_v19  ;;  %v1723_v30 = vmul.f32 %v3751_v26, %v1661_v39 }
 0x770   :  { %1752 = vst [vmem:[#allocation9 + $0x10] sm:$0xff] %v1736_v45  ;;  %v1722_v60 = vmul.f32 %v3751_v26, %v1656_v57  ;;  %v2477_v41 = vpop.f32.mrb[54].mxu1 }
 0x771   :  { %v1739_v22 = vadd.f32 %v1723_v30, %v3659_v50  ;;  %v1671_v15 = vadd.f32 %v3622_v46, %v2477_v41  ;;  %v1665_v6 = vpop.f32.mrb[55].mxu1 }
 0x772   :  { %v1738_v62 = vadd.f32 %v1722_v60, %v3655_v7  ;;  %v1666_v21 = vadd.f32 %v3622_v46, %v1665_v6 }
 0x773   :  { %1755 = vst [vmem:[#allocation9 + $0x28] sm:$0xff] %v1739_v22  ;;  %v1725_v24 = vmul.f32 %v3751_v26, %v1671_v15 }
 0x774   :  { %1754 = vst [vmem:[#allocation9 + $0x20] sm:$0xff] %v1738_v62  ;;  %v1724_v53 = vmul.f32 %v3751_v26, %v1666_v21  ;;  %v2480_v38 = vpop.f32.mrb[56].mxu1 }
 0x775   :  { %v1741_v58 = vadd.f32 %v1725_v24, %v3671_v47  ;;  %v1681_v20 = vadd.f32 %v3622_v46, %v2480_v38  ;;  %v1675_v28 = vpop.f32.mrb[57].mxu1 }
 0x776   :  { %v1740_v50 = vadd.f32 %v1724_v53, %v3667_v3  ;;  %v1676_v37 = vadd.f32 %v3622_v46, %v1675_v28 }
 0x777   :  { %1757 = vst [vmem:[#allocation9 + $0x38] sm:$0xff] %v1741_v58  ;;  %v1727_v7 = vmul.f32 %v3751_v26, %v1681_v20 }
 0x778   :  { %1756 = vst [vmem:[#allocation9 + $0x30] sm:$0xff] %v1740_v50  ;;  %v1726_v34 = vmul.f32 %v3751_v26, %v1676_v37  ;;  %v2483_v27 = vpop.f32.mrb[58].mxu1 }
 0x779   :  { %v1743_v48 = vadd.f32 %v1727_v7, %v3683_v31  ;;  %v1691_v0 = vadd.f32 %v3622_v46, %v2483_v27  ;;  %v1685_v35 = vpop.f32.mrb[59].mxu1 }
 0x77a   :  { %v1742_v47 = vadd.f32 %v1726_v34, %v3679_v5  ;;  %v1686_v52 = vadd.f32 %v3622_v46, %v1685_v35 }
 0x77b   :  { %1759 = vst [vmem:[#allocation9 + $0x48] sm:$0xff] %v1743_v48  ;;  %v1729_v3 = vmul.f32 %v3751_v26, %v1691_v0 }
 0x77c   :  { %1758 = vst [vmem:[#allocation9 + $0x40] sm:$0xff] %v1742_v47  ;;  %v1728_v43 = vmul.f32 %v3751_v26, %v1686_v52  ;;  %v2486_v4 = vpop.f32.mrb[60].mxu1 }
 0x77d   :  { %v1745_v33 = vadd.f32 %v1729_v3, %v3695_v59  ;;  %v1701_v42 = vadd.f32 %v3622_v46, %v2486_v4  ;;  %v1695_v49 = vpop.f32.mrb[61].mxu1 }
 0x77e   :  { %v1744_v31 = vadd.f32 %v1728_v43, %v3691_v8  ;;  %v1696_v25 = vadd.f32 %v3622_v46, %v1695_v49 }
 0x77f   :  { %1761 = vst [vmem:[#allocation9 + $0x58] sm:$0xff] %v1745_v33  ;;  %v1731_v5 = vmul.f32 %v3751_v26, %v1701_v42 }
 0x780   :  { %1760 = vst [vmem:[#allocation9 + $0x50] sm:$0xff] %v1744_v31  ;;  %v1730_v2 = vmul.f32 %v3751_v26, %v1696_v25  ;;  %v2489_v1 = vpop.f32.mrb[62].mxu1 }
 0x781   :  { %v1747_v23 = vadd.f32 %v1731_v5, %v3707_v18  ;;  %v1711_v13 = vadd.f32 %v3622_v46, %v2489_v1  ;;  %v1705_v44 = vpop.f32.mrb[63].mxu1 }
 0x782   :  { %v1746_v59 = vadd.f32 %v1730_v2, %v3703_v12  ;;  %v1706_v16 = vadd.f32 %v3622_v46, %v1705_v44 }
 0x783   :  { %1763 = vst [vmem:[#allocation9 + $0x68] sm:$0xff] %v1747_v23  ;;  %v1733_v8 = vmul.f32 %v3751_v26, %v1711_v13 }
 0x784   :  { %1762 = vst [vmem:[#allocation9 + $0x60] sm:$0xff] %v1746_v59  ;;  %v1732_v56 = vmul.f32 %v3751_v26, %v1706_v16 }
 0x785   :  { %v1749_v9 = vadd.f32 %v1733_v8, %v3716_v32 }
 0x786   :  { %v1748_v51 = vadd.f32 %v1732_v56, %v3713_v63 }
 0x787   :  { %1765 = vst [vmem:[#allocation9 + $0x78] sm:$0xff] %v1749_v9 }
 0x788   :  { %1764 = vst [vmem:[#allocation9 + $0x70] sm:$0xff] %v1748_v51 }
 0x789   :  { %2959 = shalt.err (!%p2956_p0)
}
 0x78a   :  { %s2960_s7 = scalar_lea.hbm %s3822_s6, 2048 }
 0x78b   :  { %p2961_p1 = scmp.ne.s32.totalorder %s3822_s6, %s2960_s7  ;;  %p2964_p2 = scmp.lt.u32.totalorder %s2960_s7, %s3822_s6 }
 0x78d   :  { %p2966_p3 = pnand %p2964_p2, %p2961_p1 }
 0x78f   :  { %2969 = shalt.err (!%p2966_p3)
}
 0x790   :  { %1777 = dma.vmem_to_hbm [thread:$0]  %s1772_s27, 2048, %s3822_s6, [#allocation5], %s2978_s9, %s2978_s9, %s2979_s10  }
 0x791   :  { %2974 = dma.done.wait [#allocation5], 2048  }
 0x792   :  { %2975 = vsyncadd [#allocation5], 4294965248 }
 0x793   :  { %1781 = vsyncpa [#allocation4], 1 }
 0x794   :  { %1782 = vsyncpa [#allocation7], 1 }
 0x795   :  { %1783 = vsyncpa [#allocation5], 1 }

</bundles_post_ra>
